<compile_context>
chip_gen: v5e
topology: v5e:2x2
jax: 0.10.0
libtpu: 0.0.40
codegen_flags: <defaults>
</compile_context>

<pallas_src>
import jax
import jax.numpy as jnp
from jax.experimental import pallas as pl
from jax.experimental.pallas import tpu as pltpu


def _round_up(a: int, b: int) -> int:
    return (a + b - 1) // b * b


def _graphconv_kernel(adj_f_ref, adj_b_ref, x_cols_ref, x_rows_ref,
                      dinvf_c_ref, dinvb_c_ref, dinvf_r_ref, dinvb_r_ref,
                      wg_ref, wo_ref, b_ref, out_ref, acc_ref):
    """Grid = (row tiles ["parallel"], k tiles ["arbitrary", reduction, last])."""
    k = pl.program_id(1)
    cp = wo_ref.shape[1]                  # padded C_out (lane-dense multiple of 128)

    @pl.when(k == 0)
    def _init():
        acc_ref[...] = jnp.zeros_like(acc_ref)

    # Fused per-direction feature transform for this column block of nodes:
    #   zc = x_k @ [Wg_f^T | Wg_b^T]   -> [tk, 2*cp]
    zc = jnp.dot(x_cols_ref[...], wg_ref[...], preferred_element_type=jnp.float32)
    z_f = (zc[:, :cp] * dinvf_c_ref[...]).astype(jnp.bfloat16)   # D_f^-1/2 X Wf
    z_b = (zc[:, cp:] * dinvb_c_ref[...]).astype(jnp.bfloat16)   # D_b^-1/2 X Wb

    # Aggregation (the big matmuls, K = tk): bf16 operands, f32 accumulate.
    acc_ref[:, :cp] += jnp.dot(adj_f_ref[...], z_f, preferred_element_type=jnp.float32)
    acc_ref[:, cp:] += jnp.dot(adj_b_ref[...], z_b, preferred_element_type=jnp.float32)

    @pl.when(k == pl.num_programs(1) - 1)
    def _finalize():
        # Self-loop term (A_hat = A + I, without materializing I) + row-side D^-1/2.
        zr = jnp.dot(x_rows_ref[...], wg_ref[...], preferred_element_type=jnp.float32)
        u_f = dinvf_r_ref[...] * (acc_ref[:, :cp] + dinvf_r_ref[...] * zr[:, :cp])
        u_b = dinvb_r_ref[...] * (acc_ref[:, cp:] + dinvb_r_ref[...] * zr[:, cp:])
        u = jnp.concatenate([u_f, u_b], axis=-1)        # concat([y_f, y_b]) minus biases
        # Fused output Linear: one [tm, 2*cp] @ [2*cp, cp] matmul + folded bias.
        out_ref[...] = (jnp.dot(u, wo_ref[...], preferred_element_type=jnp.float32)
                        + b_ref[...]).astype(out_ref.dtype)


def graph_conv_forward(x, edges, params, *, tm=128, tk=512):
    """x: [N, C_in] float32, edges: [2, E] int32 (row 0 = src, row 1 = dst)."""
    n, c_in = x.shape
    c_out = params["w_lin"].shape[0]
    src, dst = edges[0], edges[1]

    lane = 128
    # Tile / pad sizes: tk (lane dim of adjacency blocks) is a multiple of 128,
    # n_pad a multiple of both tiles, feature dims lane-dense (multiples of 128).
    tk = min(tk, _round_up(n, lane))
    n_pad = _round_up(n, tk)
    tm = min(tm, n_pad)
    if n_pad % tm:
        tm = lane
    c_in_p = _round_up(c_in, lane)
    c_out_p = _round_up(c_out, lane)

    # --- Densify per-direction adjacency + degrees (cheap O(E) scatters). ---
    def direction(mask):
        w = mask.astype(jnp.float32)
        # adj[i, j] = #edges j -> i (multi-edges counted; self-edges excluded by mask)
        adj = jnp.zeros((n_pad, n_pad), jnp.float32).at[dst, src].add(w)
        deg = jnp.zeros((n_pad,), jnp.float32).at[dst].add(w) + 1.0   # in-degree + self loop
        dinv = jax.lax.rsqrt(deg).reshape(n_pad, 1)
        return adj.astype(jnp.bfloat16), dinv   # small integer counts exact in bf16

    adj_f, dinv_f = direction(src < dst)    # forward edges  (src < dst)
    adj_b, dinv_b = direction(src > dst)    # backward edges (src > dst)

    x_p = jnp.pad(x.astype(jnp.float32), ((0, n_pad - n), (0, c_in_p - c_in)))

    # --- Fused, zero-padded weights. ---
    # [C_in_p, 2*C_out_p]: one matmul computes both directions' X @ W^T.
    wg_cat = jnp.zeros((c_in_p, 2 * c_out_p), jnp.float32)
    wg_cat = wg_cat.at[:c_in, :c_out].set(params["wg_f"].T)
    wg_cat = wg_cat.at[:c_in, c_out_p:c_out_p + c_out].set(params["wg_b"].T)

    w1 = params["w_lin"][:, :c_out].T       # acts on y_f
    w2 = params["w_lin"][:, c_out:].T       # acts on y_b
    w_out_cat = jnp.zeros((2 * c_out_p, c_out_p), jnp.float32)
    w_out_cat = w_out_cat.at[:c_out, :c_out].set(w1)
    w_out_cat = w_out_cat.at[c_out_p:c_out_p + c_out, :c_out].set(w2)

    # Fold all biases: W(concat(y)) + b == u @ Wcat + (bg_f @ W1 + bg_b @ W2 + b_lin)
    b_small = params["b_lin"] + params["bg_f"] @ w1 + params["bg_b"] @ w2
    b_eff = jnp.zeros((1, c_out_p), jnp.float32).at[0, :c_out].set(b_small)

    grid = (n_pad // tm, n_pad // tk)

    in_specs = [
        pl.BlockSpec((tm, tk), lambda i, k: (i, k)),               # adj_f block
        pl.BlockSpec((tm, tk), lambda i, k: (i, k)),               # adj_b block
        pl.BlockSpec((tk, c_in_p), lambda i, k: (k, 0)),           # x column-block
        pl.BlockSpec((tm, c_in_p), lambda i, k: (i, 0)),           # x row-block (self loop)
        pl.BlockSpec((tk, 1), lambda i, k: (k, 0)),                # dinv_f (columns)
        pl.BlockSpec((tk, 1), lambda i, k: (k, 0)),                # dinv_b (columns)
        pl.BlockSpec((tm, 1), lambda i, k: (i, 0)),                # dinv_f (rows)
        pl.BlockSpec((tm, 1), lambda i, k: (i, 0)),                # dinv_b (rows)
        pl.BlockSpec((c_in_p, 2 * c_out_p), lambda i, k: (0, 0)),  # wg_cat (resident)
        pl.BlockSpec((2 * c_out_p, c_out_p), lambda i, k: (0, 0)), # w_out_cat (resident)
        pl.BlockSpec((1, c_out_p), lambda i, k: (0, 0)),           # b_eff (resident)
    ]
    out_spec = pl.BlockSpec((tm, c_out_p), lambda i, k: (i, 0))

    out_p = pl.pallas_call(
        _graphconv_kernel,
        grid=grid,
        in_specs=in_specs,
        out_specs=out_spec,
        out_shape=jax.ShapeDtypeStruct((n_pad, c_out_p), jnp.float32),
        scratch_shapes=[pltpu.VMEM((tm, 2 * c_out_p), jnp.float32)],
        compiler_params=pltpu.CompilerParams(
            dimension_semantics=("parallel", "arbitrary"),
            vmem_limit_bytes=32 * 1024 * 1024),
    )(adj_f, adj_b, x_p, x_p, dinv_f, dinv_b, dinv_f, dinv_b,
      wg_cat, w_out_cat, b_eff)

    return out_p[:n, :c_out]


def ref_forward(x, edges, params):
    """Pure-JAX reference mirroring torch_geometric GCNConv + bidirectional concat + Linear."""
    n = x.shape[0]
    src, dst = edges[0], edges[1]

    def gcn(mask, wg, bg):
        w = mask.astype(jnp.float32)
        adj = jnp.zeros((n, n), jnp.float32).at[dst, src].add(w)
        a_hat = adj + jnp.eye(n, dtype=jnp.float32)
        deg = a_hat.sum(axis=1)
        dinv = deg ** -0.5
        n_hat = dinv[:, None] * a_hat * dinv[None, :]
        return n_hat @ (x @ wg.T) + bg

    y = jnp.concatenate([gcn(src < dst, params["wg_f"], params["bg_f"]),
                         gcn(src > dst, params["wg_b"], params["bg_b"])], axis=-1)
    return y @ params["w_lin"].T + params["b_lin"]


if __name__ == "__main__":
    # Module config: in_channels=8, out_channels=8, gnn_type='gcn',
    # add_self_loops=True, bidirectional=True  ->  W: Linear(2*out_channels, out_channels).
    # TODO(synk): only the gnn_type='gcn' path is implemented; 'gat'/'gtn'
    # (attention-based convolutions) would need separate kernels.
    N, C_IN, C_OUT, E = 160, 8, 8, 512

    key = jax.random.PRNGKey(0)
    k_x, k_e, k_wf, k_bf, k_wb, k_bb, k_wl, k_bl = jax.random.split(key, 8)

    x = jax.random.normal(k_x, (N, C_IN), dtype=jnp.float32)
    edges = jax.random.randint(k_e, (2, E), 0, N, dtype=jnp.int32)

    # Deterministic synthetic parameters (shapes match the PyTorch module's __init__).
    params = {
        "wg_f": jax.random.normal(k_wf, (C_OUT, C_IN), jnp.float32) * 0.2,        # GCNConv[0].lin.weight
        "bg_f": jax.random.normal(k_bf, (C_OUT,), jnp.float32) * 0.1,             # GCNConv[0].bias
        "wg_b": jax.random.normal(k_wb, (C_OUT, C_IN), jnp.float32) * 0.2,        # GCNConv[1].lin.weight
        "bg_b": jax.random.normal(k_bb, (C_OUT,), jnp.float32) * 0.1,             # GCNConv[1].bias
        "w_lin": jax.random.normal(k_wl, (C_OUT, 2 * C_OUT), jnp.float32) * 0.2,  # W.weight
        "b_lin": jax.random.normal(k_bl, (C_OUT,), jnp.float32) * 0.1,            # W.bias
    }

    # Small tiles so the demo exercises a real (rows x k) grid: n_pad=256 -> grid (4, 2).
    out = graph_conv_forward(x, edges, params, tm=64, tk=128)
    out = jax.block_until_ready(out)

    ref = ref_forward(x, edges, params)
    assert out.shape == (N, C_OUT)
    err = float(jnp.max(jnp.abs(out - ref)))
    # bf16 aggregation operands -> ~1e-3 abs error; tolerance reflects that.
    assert jnp.allclose(out, ref, atol=2e-2, rtol=2e-2), f"mismatch vs reference (max abs err {err})"

    print("KERNEL_OK")
</pallas_src>

<mosaic_0001>
module attributes {stable_mosaic.version = 11 : i64} {
  func.func @_graphconv_kernel(%arg0: i32, %arg1: i32, %arg2: memref<64x128xbf16, #tpu.memory_space<vmem>>, %arg3: memref<64x128xbf16, #tpu.memory_space<vmem>>, %arg4: memref<128x128xf32, #tpu.memory_space<vmem>>, %arg5: memref<64x128xf32, #tpu.memory_space<vmem>>, %arg6: memref<128x1xf32, #tpu.memory_space<vmem>>, %arg7: memref<128x1xf32, #tpu.memory_space<vmem>>, %arg8: memref<64x1xf32, #tpu.memory_space<vmem>>, %arg9: memref<64x1xf32, #tpu.memory_space<vmem>>, %arg10: memref<128x256xf32, #tpu.memory_space<vmem>>, %arg11: memref<256x128xf32, #tpu.memory_space<vmem>>, %arg12: memref<1x128xf32, #tpu.memory_space<vmem>>, %arg13: memref<64x128xf32, #tpu.memory_space<vmem>>, %arg14: memref<64x256xf32, #tpu.memory_space<vmem>>) attributes {dimension_semantics = [#tpu.dimension_semantics<parallel>, #tpu.dimension_semantics<arbitrary>], iteration_bounds = array<i64: 4, 2>, scalar_prefetch = 0 : i64, scratch_operands = 1 : i64, tpu.core_type = #tpu.core_type<tc>, window_params = [{transform_indices = @transform_0, window_bounds = array<i64: 64, 128>}, {transform_indices = @transform_1, window_bounds = array<i64: 64, 128>}, {transform_indices = @transform_2, window_bounds = array<i64: 128, 128>}, {transform_indices = @transform_3, window_bounds = array<i64: 64, 128>}, {transform_indices = @transform_4, window_bounds = array<i64: 128, 1>}, {transform_indices = @transform_5, window_bounds = array<i64: 128, 1>}, {transform_indices = @transform_6, window_bounds = array<i64: 64, 1>}, {transform_indices = @transform_7, window_bounds = array<i64: 64, 1>}, {pipeline_mode = #tpu.pipeline_mode<synchronous>, transform_indices = @transform_8, window_bounds = array<i64: 128, 256>}, {pipeline_mode = #tpu.pipeline_mode<synchronous>, transform_indices = @transform_9, window_bounds = array<i64: 256, 128>}, {pipeline_mode = #tpu.pipeline_mode<synchronous>, transform_indices = @transform_10, window_bounds = array<i64: 1, 128>}, {transform_indices = @transform_11, window_bounds = array<i64: 64, 128>}]} {
    %c0_i32 = arith.constant 0 : i32
    %0 = arith.cmpi eq, %arg1, %c0_i32 : i32
    %1 = arith.extui %0 : i1 to i32
    %c0_i32_0 = arith.constant 0 : i32
    %2 = arith.cmpi ne, %1, %c0_i32_0 : i32
    scf.if %2 {
      %cst_22 = arith.constant 0.000000e+00 : f32
      %29 = vector.broadcast %cst_22 : f32 to vector<64x256xf32>
      %c0_23 = arith.constant 0 : index
      %c0_24 = arith.constant 0 : index
      %30 = vector.load %arg14[%c0_23, %c0_24] : memref<64x256xf32, #tpu.memory_space<vmem>>, vector<64x256xf32>
      tpu.vector_store %arg14[%c0_23, %c0_24], %29 {strides = array<i32>} : memref<64x256xf32, #tpu.memory_space<vmem>>, vector<64x256xf32>,
    } else {
    }
    %c0 = arith.constant 0 : index
    %c0_1 = arith.constant 0 : index
    %3 = vector.load %arg4[%c0, %c0_1] : memref<128x128xf32, #tpu.memory_space<vmem>>, vector<128x128xf32>
    %c0_2 = arith.constant 0 : index
    %c0_3 = arith.constant 0 : index
    %4 = vector.load %arg10[%c0_2, %c0_3] : memref<128x256xf32, #tpu.memory_space<vmem>>, vector<128x256xf32>
    %cst = arith.constant dense<0.000000e+00> : vector<128x256xf32>
    %5 = tpu.matmul %3, %4, %cst {dimension_numbers = #tpu.dot_dimension_numbers<[1], [0], [0], [1], [0, 0, 1, 1], [], []>} : vector<128x128xf32>, vector<128x256xf32>, vector<128x256xf32> -> vector<128x256xf32>
    %6 = vector.extract_strided_slice %5 {offsets = [0, 0], sizes = [128, 128], strides = [1, 1]} : vector<128x256xf32> to vector<128x128xf32>
    %c0_4 = arith.constant 0 : index
    %c0_5 = arith.constant 0 : index
    %7 = vector.load %arg6[%c0_4, %c0_5] : memref<128x1xf32, #tpu.memory_space<vmem>>, vector<128x1xf32>
    %8 = vector.broadcast %7 : vector<128x1xf32> to vector<128x128xf32>
    %9 = arith.mulf %6, %8 : vector<128x128xf32>
    %10 = arith.truncf %9 : vector<128x128xf32> to vector<128x128xbf16>
    %11 = vector.extract_strided_slice %5 {offsets = [0, 128], sizes = [128, 128], strides = [1, 1]} : vector<128x256xf32> to vector<128x128xf32>
    %c0_6 = arith.constant 0 : index
    %c0_7 = arith.constant 0 : index
    %12 = vector.load %arg7[%c0_6, %c0_7] : memref<128x1xf32, #tpu.memory_space<vmem>>, vector<128x1xf32>
    %13 = vector.broadcast %12 : vector<128x1xf32> to vector<128x128xf32>
    %14 = arith.mulf %11, %13 : vector<128x128xf32>
    %15 = arith.truncf %14 : vector<128x128xf32> to vector<128x128xbf16>
    %c0_8 = arith.constant 0 : index
    %c0_9 = arith.constant 0 : index
    %16 = vector.load %arg14[%c0_8, %c0_9] : memref<64x256xf32, #tpu.memory_space<vmem>>, vector<64x128xf32>
    %c0_10 = arith.constant 0 : index
    %c0_11 = arith.constant 0 : index
    %17 = vector.load %arg2[%c0_10, %c0_11] : memref<64x128xbf16, #tpu.memory_space<vmem>>, vector<64x128xbf16>
    %cst_12 = arith.constant dense<0.000000e+00> : vector<64x128xf32>
    %18 = tpu.matmul %17, %10, %cst_12 {dimension_numbers = #tpu.dot_dimension_numbers<[1], [0], [0], [1], [0, 0, 1, 1], [], []>} : vector<64x128xbf16>, vector<128x128xbf16>, vector<64x128xf32> -> vector<64x128xf32>
    %19 = arith.addf %16, %18 : vector<64x128xf32>
    %c0_13 = arith.constant 0 : index
    %c0_14 = arith.constant 0 : index
    %20 = vector.load %arg14[%c0_13, %c0_14] : memref<64x256xf32, #tpu.memory_space<vmem>>, vector<64x128xf32>
    tpu.vector_store %arg14[%c0_13, %c0_14], %19 {strides = array<i32>} : memref<64x256xf32, #tpu.memory_space<vmem>>, vector<64x128xf32>,
    %c0_15 = arith.constant 0 : index
    %c128 = arith.constant 128 : index
    %21 = vector.load %arg14[%c0_15, %c128] : memref<64x256xf32, #tpu.memory_space<vmem>>, vector<64x128xf32>
    %c0_16 = arith.constant 0 : index
    %c0_17 = arith.constant 0 : index
    %22 = vector.load %arg3[%c0_16, %c0_17] : memref<64x128xbf16, #tpu.memory_space<vmem>>, vector<64x128xbf16>
    %cst_18 = arith.constant dense<0.000000e+00> : vector<64x128xf32>
    %23 = tpu.matmul %22, %15, %cst_18 {dimension_numbers = #tpu.dot_dimension_numbers<[1], [0], [0], [1], [0, 0, 1, 1], [], []>} : vector<64x128xbf16>, vector<128x128xbf16>, vector<64x128xf32> -> vector<64x128xf32>
    %24 = arith.addf %21, %23 : vector<64x128xf32>
    %c0_19 = arith.constant 0 : index
    %c128_20 = arith.constant 128 : index
    %25 = vector.load %arg14[%c0_19, %c128_20] : memref<64x256xf32, #tpu.memory_space<vmem>>, vector<64x128xf32>
    tpu.vector_store %arg14[%c0_19, %c128_20], %24 {strides = array<i32>} : memref<64x256xf32, #tpu.memory_space<vmem>>, vector<64x128xf32>,
    %c1_i32 = arith.constant 1 : i32
    %26 = arith.cmpi eq, %arg1, %c1_i32 : i32
    %27 = arith.extui %26 : i1 to i32
    %c0_i32_21 = arith.constant 0 : i32
    %28 = arith.cmpi ne, %27, %c0_i32_21 : i32
    scf.if %28 {
      %c0_22 = arith.constant 0 : index
      %c0_23 = arith.constant 0 : index
      %29 = vector.load %arg5[%c0_22, %c0_23] : memref<64x128xf32, #tpu.memory_space<vmem>>, vector<64x128xf32>
      %c0_24 = arith.constant 0 : index
      %c0_25 = arith.constant 0 : index
      %30 = vector.load %arg10[%c0_24, %c0_25] : memref<128x256xf32, #tpu.memory_space<vmem>>, vector<128x256xf32>
      %cst_26 = arith.constant dense<0.000000e+00> : vector<64x256xf32>
      %31 = tpu.matmul %29, %30, %cst_26 {dimension_numbers = #tpu.dot_dimension_numbers<[1], [0], [0], [1], [0, 0, 1, 1], [], []>} : vector<64x128xf32>, vector<128x256xf32>, vector<64x256xf32> -> vector<64x256xf32>
      %c0_27 = arith.constant 0 : index
      %c0_28 = arith.constant 0 : index
      %32 = vector.load %arg8[%c0_27, %c0_28] : memref<64x1xf32, #tpu.memory_space<vmem>>, vector<64x1xf32>
      %c0_29 = arith.constant 0 : index
      %c0_30 = arith.constant 0 : index
      %33 = vector.load %arg14[%c0_29, %c0_30] : memref<64x256xf32, #tpu.memory_space<vmem>>, vector<64x128xf32>
      %c0_31 = arith.constant 0 : index
      %c0_32 = arith.constant 0 : index
      %34 = vector.load %arg8[%c0_31, %c0_32] : memref<64x1xf32, #tpu.memory_space<vmem>>, vector<64x1xf32>
      %35 = vector.extract_strided_slice %31 {offsets = [0, 0], sizes = [64, 128], strides = [1, 1]} : vector<64x256xf32> to vector<64x128xf32>
      %36 = vector.broadcast %34 : vector<64x1xf32> to vector<64x128xf32>
      %37 = arith.mulf %36, %35 : vector<64x128xf32>
      %38 = arith.addf %33, %37 : vector<64x128xf32>
      %39 = vector.broadcast %32 : vector<64x1xf32> to vector<64x128xf32>
      %40 = arith.mulf %39, %38 : vector<64x128xf32>
      %c0_33 = arith.constant 0 : index
      %c0_34 = arith.constant 0 : index
      %41 = vector.load %arg9[%c0_33, %c0_34] : memref<64x1xf32, #tpu.memory_space<vmem>>, vector<64x1xf32>
      %c0_35 = arith.constant 0 : index
      %c128_36 = arith.constant 128 : index
      %42 = vector.load %arg14[%c0_35, %c128_36] : memref<64x256xf32, #tpu.memory_space<vmem>>, vector<64x128xf32>
      %c0_37 = arith.constant 0 : index
      %c0_38 = arith.constant 0 : index
      %43 = vector.load %arg9[%c0_37, %c0_38] : memref<64x1xf32, #tpu.memory_space<vmem>>, vector<64x1xf32>
      %44 = vector.extract_strided_slice %31 {offsets = [0, 128], sizes = [64, 128], strides = [1, 1]} : vector<64x256xf32> to vector<64x128xf32>
      %45 = vector.broadcast %43 : vector<64x1xf32> to vector<64x128xf32>
      %46 = arith.mulf %45, %44 : vector<64x128xf32>
      %47 = arith.addf %42, %46 : vector<64x128xf32>
      %48 = vector.broadcast %41 : vector<64x1xf32> to vector<64x128xf32>
      %49 = arith.mulf %48, %47 : vector<64x128xf32>
      %50 = tpu.concatenate %40, %49 in 1 : vector<64x128xf32>, vector<64x128xf32> -> vector<64x256xf32>
      %c0_39 = arith.constant 0 : index
      %c0_40 = arith.constant 0 : index
      %51 = vector.load %arg11[%c0_39, %c0_40] : memref<256x128xf32, #tpu.memory_space<vmem>>, vector<256x128xf32>
      %cst_41 = arith.constant dense<0.000000e+00> : vector<64x128xf32>
      %52 = tpu.matmul %50, %51, %cst_41 {dimension_numbers = #tpu.dot_dimension_numbers<[1], [0], [0], [1], [0, 0, 1, 1], [], []>} : vector<64x256xf32>, vector<256x128xf32>, vector<64x128xf32> -> vector<64x128xf32>
      %c0_42 = arith.constant 0 : index
      %c0_43 = arith.constant 0 : index
      %53 = vector.load %arg12[%c0_42, %c0_43] : memref<1x128xf32, #tpu.memory_space<vmem>>, vector<1x128xf32>
      %54 = vector.broadcast %53 : vector<1x128xf32> to vector<64x128xf32>
      %55 = arith.addf %52, %54 : vector<64x128xf32>
      %c0_44 = arith.constant 0 : index
      %c0_45 = arith.constant 0 : index
      %56 = vector.load %arg13[%c0_44, %c0_45] : memref<64x128xf32, #tpu.memory_space<vmem>>, vector<64x128xf32>
      tpu.vector_store %arg13[%c0_44, %c0_45], %55 {strides = array<i32>} : memref<64x128xf32, #tpu.memory_space<vmem>>, vector<64x128xf32>,
    } else {
    }
    return
  }
  func.func @transform_0(%arg0: i32, %arg1: i32) -> (i32, i32) {
    %c0_i32 = arith.constant 0 : i32
    return %arg0, %arg1 : i32, i32
  }
  func.func @transform_1(%arg0: i32, %arg1: i32) -> (i32, i32) {
    %c0_i32 = arith.constant 0 : i32
    return %arg0, %arg1 : i32, i32
  }
  func.func @transform_2(%arg0: i32, %arg1: i32) -> (i32, i32) {
    %c0_i32 = arith.constant 0 : i32
    %c0_i32_0 = arith.constant 0 : i32
    return %arg1, %c0_i32 : i32, i32
  }
  func.func @transform_3(%arg0: i32, %arg1: i32) -> (i32, i32) {
    %c0_i32 = arith.constant 0 : i32
    %c0_i32_0 = arith.constant 0 : i32
    return %arg0, %c0_i32 : i32, i32
  }
  func.func @transform_4(%arg0: i32, %arg1: i32) -> (i32, i32) {
    %c0_i32 = arith.constant 0 : i32
    %c0_i32_0 = arith.constant 0 : i32
    return %arg1, %c0_i32 : i32, i32
  }
  func.func @transform_5(%arg0: i32, %arg1: i32) -> (i32, i32) {
    %c0_i32 = arith.constant 0 : i32
    %c0_i32_0 = arith.constant 0 : i32
    return %arg1, %c0_i32 : i32, i32
  }
  func.func @transform_6(%arg0: i32, %arg1: i32) -> (i32, i32) {
    %c0_i32 = arith.constant 0 : i32
    %c0_i32_0 = arith.constant 0 : i32
    return %arg0, %c0_i32 : i32, i32
  }
  func.func @transform_7(%arg0: i32, %arg1: i32) -> (i32, i32) {
    %c0_i32 = arith.constant 0 : i32
    %c0_i32_0 = arith.constant 0 : i32
    return %arg0, %c0_i32 : i32, i32
  }
  func.func @transform_8(%arg0: i32, %arg1: i32) -> (i32, i32) {
    %c0_i32 = arith.constant 0 : i32
    %c0_i32_0 = arith.constant 0 : i32
    %c0_i32_1 = arith.constant 0 : i32
    return %c0_i32, %c0_i32_0 : i32, i32
  }
  func.func @transform_9(%arg0: i32, %arg1: i32) -> (i32, i32) {
    %c0_i32 = arith.constant 0 : i32
    %c0_i32_0 = arith.constant 0 : i32
    %c0_i32_1 = arith.constant 0 : i32
    return %c0_i32, %c0_i32_0 : i32, i32
  }
  func.func @transform_10(%arg0: i32, %arg1: i32) -> (i32, i32) {
    %c0_i32 = arith.constant 0 : i32
    %c0_i32_0 = arith.constant 0 : i32
    %c0_i32_1 = arith.constant 0 : i32
    return %c0_i32, %c0_i32_0 : i32, i32
  }
  func.func @transform_11(%arg0: i32, %arg1: i32) -> (i32, i32) {
    %c0_i32 = arith.constant 0 : i32
    %c0_i32_0 = arith.constant 0 : i32
    return %arg0, %c0_i32 : i32, i32
  }
}

</mosaic_0001>

<bundles_post_ra>
// kernel: tpu_custom_call.1
= control target key start
LH: loop header
LB: loop body
LE: loop exit
PB: predicated region body
PF: predicated region fallthrough
CT: control target
= control target key end

     0   :  { %s2853_s0 = inlined_call_operand.vmem [shape: bf16[256,256], index: 0, kind: input, shape index: {}]   ;;  %s2854_s1 = inlined_call_operand.vmem [shape: bf16[256,256], index: 1, kind: input, shape index: {}]   ;;  %s2855_s2 = inlined_call_operand.vmem [shape: f32[256,128], index: 2, kind: input, shape index: {}]   ;;  %s2856_s3 = inlined_call_operand.vmem [shape: f32[256,128], index: 3, kind: input, shape index: {}]   ;;  %s2857_s4 = inlined_call_operand.vmem [shape: f32[256,1], index: 4, kind: input, shape index: {}]   ;;  %s2858_s5 = inlined_call_operand.vmem [shape: f32[256,1], index: 5, kind: input, shape index: {}]   ;;  %s2859_s6 = inlined_call_operand.vmem [shape: f32[256,1], index: 6, kind: input, shape index: {}]   ;;  %s2860_s7 = inlined_call_operand.vmem [shape: f32[256,1], index: 7, kind: input, shape index: {}]   ;;  %s2861_s8 = inlined_call_operand.hbm [shape: f32[128,256], index: 8, kind: input, shape index: {}]   ;;  %s2862_s9 = inlined_call_operand.hbm [shape: f32[256,128], index: 9, kind: input, shape index: {}]   ;;  %s2863_s10 = inlined_call_operand.vmem [shape: f32[1,128], index: 10, kind: input, shape index: {}]   ;;  %s2864_s11 = inlined_call_operand.hbm [shape: f32[256,128], index: 11, kind: output, shape index: {}]  }
   0x1   :  { %2874 = sst [smem:[#allocation23_spill]] %s2853_s0 }
   0x2   :  { %2875 = sst [smem:[#allocation24_spill]] %s2854_s1 }
   0x3   :  { %2876 = sst [smem:[#allocation25_spill]] %s2855_s2 }
   0x4   :  { %2877 = sst [smem:[#allocation26_spill]] %s2856_s3 }
   0x5   :  { %2878 = sst [smem:[#allocation27_spill]] %s2857_s4 }
   0x6   :  { %2879 = sst [smem:[#allocation28_spill]] %s2859_s6 }
   0x7   :  { %2880 = sst [smem:[#allocation29_spill]] %s2860_s7 }
   0x8   :  { %2881 = sst [smem:[#allocation30_spill]] %s2861_s8 }
   0x9   :  { %2882 = sst [smem:[#allocation31_spill]] %s2862_s9 }
   0xa   :  { %2883 = sst [smem:[#allocation32_spill]] %s2863_s10 }
   0xb   :  { %2884 = sst [smem:[#allocation33_spill]] %s2864_s11 }
   0xc   :  { %16 = vsyncpa [#allocation6], 0 }
   0xd   :  { %17 = vsyncpa [#allocation9], 0 }
   0xe   :  { %18 = vsyncpa [#allocation7], 0 }
   0xf   :  { %20 = vsyncpa [#allocation7 + $0x1], 0  ;;  %s2458_s17 = smov 0   ;;  %s2460_s18 = smov 0  }
  0x10   :  { %s2462_s19 = smov 0   ;;  %s2464_s20 = smov 0  }
  0x11   :  { %s2466_s21 = smov 0   ;;  %s2468_s22 = smov 0  }
  0x12   :  { %s2470_s23 = smov 0   ;;  %s2472_s24 = smov 0  }
  0x13   :  { %s2474_s25 = smov 0   ;;  %s2476_s26 = smov 0  }
  0x14 LB: > { %2885 = sst [smem:[#allocation14_spill]] %s2357_s19  ;;  %s1969_s27 = sadd.s32 4294967295, %s2385_s26   ;;  %s2385_s26 = sphi %s2476_s26, %s26_s26   ;;  %s2381_s25 = sphi %s2474_s25, %s2920_s25   ;;  %s2377_s24 = sphi %s2472_s24, %s2919_s24   ;;  %s2373_s23 = sphi %s2470_s23, %s2918_s23   ;;  %s2369_s22 = sphi %s2468_s22, %s2917_s22   ;;  %s2365_s21 = sphi %s2466_s21, %s2916_s21   ;;  %s2361_s20 = sphi %s2464_s20, %s2915_s20   ;;  %s2357_s19 = sphi %s2462_s19, %s2914_s19   ;;  %s2353_s18 = sphi %s2460_s18, %s2922_s18   ;;  %s2349_s17 = sphi %s2458_s17, %s2921_s17  }
  0x15   : > { %2886 = sst [smem:[#allocation15_spill]] %s2365_s21  ;;  %s1970_s28 = sadd.s32 4294967294, %s2385_s26  }
  0x16   : > { %2887 = sst [smem:[#allocation16_spill]] %s2377_s24  ;;  %s35_s29 = sadd.s32 1, %s2377_s24 }
  0x17   : > { %2888 = sst [smem:[#allocation17_spill]] %s2381_s25  ;;  %s38_s30 = sadd.s32 1, %s2381_s25 }
  0x18   : > { %p36_p0 = scmp.ge.s32.totalorder %s35_s29, 2  ;;  %s47_s12 = sadd.s32 1, %s2365_s21 }
  0x19   : > { %p54_p1 = scmp.ne.s32.totalorder %s2365_s21, %s2361_s20  ;;  %p55_p2 = scmp.eq.s32.totalorder %s2385_s26, 0 }
  0x1a   : > { %s2924_s29 = smov (%p36_p0, %s35_s29), 0  ;;  %s2926_s30 = smov (!%p36_p0, %s38_s30), %s2381_s25 }
  0x1b   : > { %2889 = sst [smem:[#allocation18_spill]] %s2924_s29  ;;  %s43_s13 = ssub.s32 %s2377_s24, %s2924_s29 }
  0x1c   : > { %p2521_p3 = por %p55_p2, %p54_p1  ;;  %p40_p4 = scmp.ge.s32.totalorder %s2926_s30, 4 }
  0x1d   : > { %s320_s15 = sadd.s32 1, %s2357_s19  ;;  %p330_p5 = scmp.ne.s32.totalorder %s2357_s19, %s2353_s18 }
  0x1e   : > { %p331_p6 = scmp.eq.s32.totalorder %s1969_s27, 7  ;;  %s2928_s30 = smov (%p40_p4, %s2926_s30), 0 }
  0x1f   : > { %2891 = sst [smem:[#allocation19_spill]] %s2928_s30  ;;  %p336_p8 = scmp.ne.s32.totalorder %s2353_s18, %s2349_s17 }
  0x20   : > { %p2530_p7 = por %p331_p6, %p330_p5  ;;  %s42_s29 = ssub.s32 %s2381_s25, %s2928_s30 }
  0x21   : > { %p337_p9 = scmp.eq.s32.totalorder %s1970_s28, 7  ;;  %s44_s11 = sor.u32 %s43_s13, %s42_s29 }
  0x22   : > { %p318_p10 = scmp.eq.s32.totalorder %s42_s29, 0  ;;  %p45_p11 = scmp.eq.s32.totalorder %s44_s11, 0 }
  0x23   : > { %p2538_p12 = por %p337_p9, %p336_p8  ;;  %p1971_p13 = scmp.ge.s32.totalorder %s2385_s26, 1 }
  0x24   : > { %s2543_s7 = scalar_select %p318_p10, %s2357_s19, %s320_s15  }
  0x25   : > { %s2893_s10 = scalar_select %p2538_p12, 1, 0 }
  0x26   : > { %2895 = sst [smem:[#allocation21_spill]] %s2543_s7  ;;  %p344_p0 = scmp.lt.s32.totalorder %s2385_s26, 9 }
  0x27   : > { %2894 = sst [smem:[#allocation20_spill]] %s2893_s10  ;;  %p2550_p1 = scmp.eq.s32.totalorder %s1969_s27, 0 }
  0x28   : > { %s2546_s6 = scalar_select %p45_p11, %s2365_s21, %s47_s12  }
  0x29   : > { %p2554_p2 = pnand %p1971_p13, %p344_p0  ;;  %s2899_s8 = sld [smem:[#allocation30_spill]] }
  0x2a   : > { %2896 = sst [smem:[#allocation22_spill]] %s2546_s6  ;;  %s2387_s12 = smov [#allocation5]  }
  0x2b   : > { %p2093_p4 = pneg %p2554_p2  ;;  %s357_s15 = sshll.u32 %s2387_s12, 4  ;;  %s358_s15 = int_to_ptr.vmem [resolvable:$true] %s357_s15 }
  0x2c   : > { %s2900_s9 = sld [smem:[#allocation31_spill]]  ;;  %s2388_s7 = smov 256  }
  0x2d   : > { %p2094_p5 = pnand %p2550_p1, %p2093_p4  ;;  %s2389_s19 = smov 16  }
  0x2e   : > { %s2390_s10 = smov [#allocation8]   ;;  %s2391_s29 = smov 128  }
  0x2f   : > { %s355_s13 = sshll.u32 %s2899_s8, 4  ;;  %s371_s11 = sshll.u32 %s2390_s10, 4  ;;  %s356_s13 = int_to_ptr.hbm [resolvable:$true] %s355_s13  ;;  %s372_s11 = int_to_ptr.vmem [resolvable:$true] %s371_s11 }
  0x30   : > { %2096 = dma.hbm_to_vmem [thread:$0]  (!%p2094_p5), %s356_s13, 4096, %s358_s15, [#allocation6], %s2388_s7, %s2388_s7, %s2389_s19  }
  0x31   : > { %s2392_s8 = smov 8   ;;  %p1974_p6 = scmp.ge.s32.totalorder %s2385_s26, 8 }
  0x32   : > { %s369_s6 = sshll.u32 %s2900_s9, 4  ;;  %s370_s6 = int_to_ptr.hbm [resolvable:$true] %s369_s6 }
  0x33   : > { %2099 = dma.hbm_to_vmem [thread:$0]  (!%p2094_p5), %s370_s6, 4096, %s372_s11, [#allocation9], %s2391_s29, %s2391_s29, %s2392_s8  }
  0x34   : > { %384 = sbr.rel (%p1974_p6) target bundleno = 93 (0x5d), region = 28 }
  0x39   : > { %387 = sbr.rel (!%p2521_p3) target bundleno = 75 (0x4b), region = 32  ;;  %s389_s30 = sand.u32 (%p2521_p3), 1, %s2365_s21  }
  0x3a   : > { %s2040_s12 = sshll.u32 (%p2521_p3), %s2381_s25, 4  ;;  %s1975_s27 = sshll.u32 (%p2521_p3), %s389_s30, 5 }
  0x3b   : > { %s394_s9 = sadd.s32 (%p2521_p3), %s2377_s24, %s2040_s12  ;;  %s2901_s0 = sld [smem:[#allocation23_spill]] (%p2521_p3) }
  0x3c   : > { %s1978_s7 = sshll.u32 (%p2521_p3), %s394_s9, 2  ;;  %s391_s6 = scalar_lea.vmem (%p2521_p3), [#allocation3], %s1975_s27 }
  0x41   : > { %s396_s13 = scalar_lea.vmem %s2901_s0, %s1978_s7 }
  0x42   : > { %v413_v0 = vld [vmem:[%s396_s13] sm:$0xf]  ;;  %v415_v1 = vld [vmem:[%s396_s13 + $0x8] sm:$0xf]  ;;  %v417_v2 = vld [vmem:[%s396_s13 + $0x10] sm:$0xf] }
  0x43   : > { %414 = vst [vmem:[%s391_s6] sm:$0xf] %v413_v0  ;;  %v419_v3 = vld [vmem:[%s396_s13 + $0x18] sm:$0xf]  ;;  %v421_v4 = vld [vmem:[%s396_s13 + $0x20] sm:$0xf] }
  0x44   : > { %416 = vst [vmem:[%s391_s6 + $0x4] sm:$0xf] %v415_v1  ;;  %v423_v5 = vld [vmem:[%s396_s13 + $0x28] sm:$0xf]  ;;  %v425_v6 = vld [vmem:[%s396_s13 + $0x30] sm:$0xf] }
  0x45   : > { %418 = vst [vmem:[%s391_s6 + $0x8] sm:$0xf] %v417_v2  ;;  %v427_v7 = vld [vmem:[%s396_s13 + $0x38] sm:$0xf] }
  0x46   : > { %420 = vst [vmem:[%s391_s6 + $0xc] sm:$0xf] %v419_v3 }
  0x47   : > { %422 = vst [vmem:[%s391_s6 + $0x10] sm:$0xf] %v421_v4 }
  0x48   : > { %424 = vst [vmem:[%s391_s6 + $0x14] sm:$0xf] %v423_v5 }
  0x49   : > { %426 = vst [vmem:[%s391_s6 + $0x18] sm:$0xf] %v425_v6 }
  0x4a   : > { %428 = vst [vmem:[%s391_s6 + $0x1c] sm:$0xf] %v427_v7 }
  0x4b PF: > { %468 = sbr.rel (!%p2521_p3) target bundleno = 93 (0x5d), region = 73  ;;  %s470_s8 = sand.u32 (%p2521_p3), 1, %s2365_s21  }
  0x4c   : > { %s2041_s9 = sshll.u32 (%p2521_p3), %s2381_s25, 4  ;;  %s1979_s15 = sshll.u32 (%p2521_p3), %s470_s8, 5 }
  0x4d   : > { %s475_s11 = sadd.s32 (%p2521_p3), %s2377_s24, %s2041_s9  ;;  %s2902_s1 = sld [smem:[#allocation24_spill]] (%p2521_p3) }
  0x4e   : > { %s1982_s29 = sshll.u32 (%p2521_p3), %s475_s11, 2  ;;  %s472_s7 = scalar_lea.vmem (%p2521_p3), [#allocation4], %s1979_s15 }
  0x53   : > { %s477_s27 = scalar_lea.vmem %s2902_s1, %s1982_s29 }
  0x54   : > { %v494_v8 = vld [vmem:[%s477_s27] sm:$0xf]  ;;  %v496_v9 = vld [vmem:[%s477_s27 + $0x8] sm:$0xf]  ;;  %v498_v10 = vld [vmem:[%s477_s27 + $0x10] sm:$0xf] }
  0x55   : > { %495 = vst [vmem:[%s472_s7] sm:$0xf] %v494_v8  ;;  %v500_v11 = vld [vmem:[%s477_s27 + $0x18] sm:$0xf]  ;;  %v502_v12 = vld [vmem:[%s477_s27 + $0x20] sm:$0xf] }
  0x56   : > { %497 = vst [vmem:[%s472_s7 + $0x4] sm:$0xf] %v496_v9  ;;  %v504_v13 = vld [vmem:[%s477_s27 + $0x28] sm:$0xf]  ;;  %v506_v14 = vld [vmem:[%s477_s27 + $0x30] sm:$0xf] }
  0x57   : > { %499 = vst [vmem:[%s472_s7 + $0x8] sm:$0xf] %v498_v10  ;;  %v508_v15 = vld [vmem:[%s477_s27 + $0x38] sm:$0xf] }
  0x58   : > { %501 = vst [vmem:[%s472_s7 + $0xc] sm:$0xf] %v500_v11 }
  0x59   : > { %503 = vst [vmem:[%s472_s7 + $0x10] sm:$0xf] %v502_v12 }
  0x5a   : > { %505 = vst [vmem:[%s472_s7 + $0x14] sm:$0xf] %v504_v13 }
  0x5b   : > { %507 = vst [vmem:[%s472_s7 + $0x18] sm:$0xf] %v506_v14 }
  0x5c   : > { %509 = vst [vmem:[%s472_s7 + $0x1c] sm:$0xf] %v508_v15 }
  0x5d PF: > { %606 = sbr.rel (%p2554_p2) target bundleno = 987 (0x3db), region = 138  ;;  %s609_s14 = sand.u32 (!%p2554_p2), 1, %s2361_s20  }
  0x5e   : > { %s1984_s19 = sshll.u32 (!%p2554_p2), %s609_s14, 5 }
  0x5f   : > { %s2588_s10 = scalar_lea.vmem (!%p2554_p2), [#allocation3], %s1984_s19  ;;  %s2590_s13 = scalar_lea.vmem (!%p2554_p2), [#allocation4], %s1984_s19 }
  0x62   : > { %2336 = dma.done.wait (%p2550_p1), [#allocation6], 4096  }
  0x63   : > { %2338 = vsyncadd (%p2550_p1), [#allocation6], 4294963200 }
  0x64   : > { %2340 = dma.done.wait (%p2550_p1), [#allocation9], 4096  }
  0x65   : > { %2342 = vsyncadd (%p2550_p1), [#allocation9], 4294963200  ;;  %s2870_s20 = sand.u32 1, %s2353_s18   ;;  %s1989_s28 = sshll.u32 %s2369_s22, 4 }
  0x66   : > { %s1988_s6 = sshll.u32 %s2870_s20, 6  ;;  %p702_p3 = scmp.lt.s32.totalorder %s1989_s28, 31 }
  0x67   : > { %s1991_s8 = sshll.u32 %s2373_s23, 3  ;;  %s2903_s2 = sld [smem:[#allocation25_spill]] }
  0x68   : > { %s2930_s28 = smov (!%p702_p3, %s1989_s28), 31  ;;  %p708_p8 = scmp.lt.s32.totalorder %s1991_s8, 31 }
  0x69   : > { %s1990_s9 = sshll.u32 %s2930_s28, 3  ;;  %s2904_s4 = sld [smem:[#allocation27_spill]] }
  0x6a   : > { %s2932_s8 = smov (!%p708_p8, %s1991_s8), 31  ;;  %s2618_s14 = scalar_lea.vmem %s2858_s5, %s1990_s9 }
  0x6b   : > { %s1992_s19 = sshll.u32 %s2932_s8, 3  ;;  %s2905_s28 = sld [smem:[#allocation26_spill]] }
  0x6c   : > { %s2635_s21 = scalar_lea.vmem [#allocation10], %s1988_s6  ;;  %p2001_p9 = scmp.ne.s32.totalorder %s2369_s22, 0 }
  0x6d   : > { %s2608_s29 = scalar_lea.vmem %s2903_s2, %s1990_s9  ;;  %s2906_s2 = sld [smem:[#allocation28_spill]] }
  0x6f   : > { %s2613_s12 = scalar_lea.vmem %s2904_s4, %s1990_s9  ;;  %s2907_s4 = sld [smem:[#allocation29_spill]] }
  0x71   : > { %s2623_s1 = scalar_lea.vmem %s2905_s28, %s1992_s19  ;;  %741 = sbr.rel (%p2001_p9) target bundleno = 135 (0x87), region = 158 }
  0x73   : > { %s2628_s25 = scalar_lea.vmem %s2906_s2, %s1992_s19 }
  0x75   : > { %s2633_s24 = scalar_lea.vmem %s2907_s4, %s1992_s19 }
  0x76   : > { %v2393_v16 = vmov 0.0  }
  0x77   : > { %742 = vst [vmem:[#allocation2 + $0x30] sm:$0xff] %v2393_v16 }
  0x78   : > { %743 = vst [vmem:[#allocation2] sm:$0xff] %v2393_v16 }
  0x79   : > { %744 = vst [vmem:[#allocation2 + $0x58] sm:$0xff] %v2393_v16 }
  0x7a   : > { %745 = vst [vmem:[#allocation2 + $0x18] sm:$0xff] %v2393_v16 }
  0x7b   : > { %746 = vst [vmem:[#allocation2 + $0x50] sm:$0xff] %v2393_v16 }
  0x7c   : > { %747 = vst [vmem:[#allocation2 + $0x68] sm:$0xff] %v2393_v16 }
  0x7d   : > { %748 = vst [vmem:[#allocation2 + $0x8] sm:$0xff] %v2393_v16 }
  0x7e   : > { %749 = vst [vmem:[#allocation2 + $0x48] sm:$0xff] %v2393_v16 }
  0x7f   : > { %750 = vst [vmem:[#allocation2 + $0x40] sm:$0xff] %v2393_v16 }
  0x80   : > { %751 = vst [vmem:[#allocation2 + $0x20] sm:$0xff] %v2393_v16 }
  0x81   : > { %752 = vst [vmem:[#allocation2 + $0x10] sm:$0xff] %v2393_v16 }
  0x82   : > { %753 = vst [vmem:[#allocation2 + $0x38] sm:$0xff] %v2393_v16 }
  0x83   : > { %754 = vst [vmem:[#allocation2 + $0x60] sm:$0xff] %v2393_v16 }
  0x84   : > { %755 = vst [vmem:[#allocation2 + $0x70] sm:$0xff] %v2393_v16 }
  0x85   : > { %756 = vst [vmem:[#allocation2 + $0x78] sm:$0xff] %v2393_v16 }
  0x86   : > { %757 = vst [vmem:[#allocation2 + $0x28] sm:$0xff] %v2393_v16 }
  0x87 PF: > { %v804_v17 = vld [vmem:[#allocation5 + $0xf0] sm:$0xff]  ;;  %v805_v18 = vld [vmem:[#allocation5 + $0xf8] sm:$0xff]  ;;  %v2394_v19 = vmov 0   ;;  %v948_v22 = vld [vmem:[%s2613_s12 + $0x60] sm:$0xff]  ;;  %p2034_p10 = scmp.ne.s32.totalorder %s2369_s22, 1 }
  0x88   : > { %2201 = vset.pattern.permute.xlu1 %v2394_v19  ;;  %2200 = vset.pattern.permute.xlu0 %v2394_v19  ;;  %v1070_v20 = vld [vmem:[%s2618_s14 + $0x70] sm:$0xff]  ;;  %v802_v23 = vld [vmem:[#allocation5 + $0xe0] sm:$0xff]  ;;  %v803_v24 = vld [vmem:[#allocation5 + $0xe8] sm:$0xff]  ;;  %s2908_s2 = sld [smem:[#allocation32_spill]] (!%p2034_p10) }
  0x89   : > { %806 = vmatpush.msra.mxu0 %v804_v17  ;;  %2051 = vmatpush.msra.mxu2 %v804_v17  ;;  %v950_v21 = vld [vmem:[%s2613_s12 + $0x70] sm:$0xff]  ;;  %v801_v26 = vld [vmem:[#allocation5 + $0xd8] sm:$0xff]  ;;  %v798_v27 = vld [vmem:[#allocation5 + $0xc0] sm:$0xff] }
  0x8a   : > { %871 = vmatpush.msra.mxu1 %v805_v18  ;;  %2067 = vmatpush.msra.mxu3 %v805_v18  ;;  %v800_v25 = vld [vmem:[#allocation5 + $0xd0] sm:$0xff]  ;;  %v799_v28 = vld [vmem:[#allocation5 + $0xc8] sm:$0xff]  ;;  %v797_v30 = vld [vmem:[#allocation5 + $0xb8] sm:$0xff] }
  0x8b   : > { %2202 = vset.pattern.permute.xlu2 %v2394_v19  ;;  %1144 = vperm.xlu1 %2201, %v1070_v20   ;;  %v796_v29 = vld [vmem:[#allocation5 + $0xb0] sm:$0xff]  ;;  %v1071_v31 = vld [vmem:[%s2618_s14 + $0x78] sm:$0xff]  ;;  %v949_v33 = vld [vmem:[%s2613_s12 + $0x68] sm:$0xff] }
  0x8c   : > { %1024 = vperm.xlu0 %2200, %v950_v21   ;;  %1014 = vperm.xlu2 %2202, %v948_v22   ;;  %v951_v32 = vld [vmem:[%s2613_s12 + $0x78] sm:$0xff]  ;;  %v794_v34 = vld [vmem:[#allocation5 + $0xa0] sm:$0xff]  ;;  %v795_v35 = vld [vmem:[#allocation5 + $0xa8] sm:$0xff] }
  0x8d   : > { %807 = vmatpush.msra.mxu0 %v802_v23  ;;  %2052 = vmatpush.msra.mxu2 %v802_v23  ;;  %v792_v36 = vld [vmem:[#allocation5 + $0x90] sm:$0xff]  ;;  %v793_v37 = vld [vmem:[#allocation5 + $0x98] sm:$0xff]  ;;  %v790_v38 = vld [vmem:[#allocation5 + $0x80] sm:$0xff] }
  0x8e   : > { %872 = vmatpush.msra.mxu1 %v803_v24  ;;  %2068 = vmatpush.msra.mxu3 %v803_v24  ;;  %v791_v39 = vld [vmem:[#allocation5 + $0x88] sm:$0xff]  ;;  %v788_v40 = vld [vmem:[#allocation5 + $0x70] sm:$0xff]  ;;  %v789_v41 = vld [vmem:[#allocation5 + $0x78] sm:$0xff] }
  0x8f   : > { %808 = vmatpush.msra.mxu0 %v800_v25  ;;  %2053 = vmatpush.msra.mxu2 %v800_v25  ;;  %v1069_v42 = vld [vmem:[%s2618_s14 + $0x68] sm:$0xff]  ;;  %v1068_v43 = vld [vmem:[%s2618_s14 + $0x60] sm:$0xff]  ;;  %v946_v44 = vld [vmem:[%s2613_s12 + $0x50] sm:$0xff] }
  0x90   : > { %873 = vmatpush.msra.mxu1 %v801_v26  ;;  %2069 = vmatpush.msra.mxu3 %v801_v26  ;;  %v786_v45 = vld [vmem:[#allocation5 + $0x60] sm:$0xff]  ;;  %v787_v46 = vld [vmem:[#allocation5 + $0x68] sm:$0xff]  ;;  %v784_v47 = vld [vmem:[#allocation5 + $0x50] sm:$0xff] }
  0x91   : > { %809 = vmatpush.msra.mxu0 %v798_v27  ;;  %2054 = vmatpush.msra.mxu2 %v798_v27  ;;  %v785_v48 = vld [vmem:[#allocation5 + $0x58] sm:$0xff]  ;;  %v782_v49 = vld [vmem:[#allocation5 + $0x40] sm:$0xff]  ;;  %v783_v50 = vld [vmem:[#allocation5 + $0x48] sm:$0xff] }
  0x92   : > { %874 = vmatpush.msra.mxu1 %v799_v28  ;;  %2070 = vmatpush.msra.mxu3 %v799_v28  ;;  %v780_v51 = vld [vmem:[#allocation5 + $0x30] sm:$0xff]  ;;  %v781_v52 = vld [vmem:[#allocation5 + $0x38] sm:$0xff]  ;;  %v778_v56 = vld [vmem:[#allocation5 + $0x20] sm:$0xff] }
  0x93   : > { %810 = vmatpush.msra.mxu0 %v796_v29  ;;  %2055 = vmatpush.msra.mxu2 %v796_v29  ;;  %v1066_v53 = vld [vmem:[%s2618_s14 + $0x50] sm:$0xff]  ;;  %v947_v54 = vld [vmem:[%s2613_s12 + $0x58] sm:$0xff]  ;;  %v779_v57 = vld [vmem:[#allocation5 + $0x28] sm:$0xff] }
  0x94   : > { %875 = vmatpush.msra.mxu1 %v797_v30  ;;  %2071 = vmatpush.msra.mxu3 %v797_v30  ;;  %v1067_v55 = vld [vmem:[%s2618_s14 + $0x58] sm:$0xff]  ;;  %v776_v58 = vld [vmem:[#allocation5 + $0x10] sm:$0xff]  ;;  %v774_v60 = vld [vmem:[#allocation5] sm:$0xff] }
  0x95   : > { %1149 = vperm.xlu1 %2201, %v1071_v31   ;;  %1029 = vperm.xlu0 %2200, %v951_v32   ;;  %v777_v59 = vld [vmem:[#allocation5 + $0x18] sm:$0xff]  ;;  %v775_v61 = vld [vmem:[#allocation5 + $0x8] sm:$0xff]  ;;  %v758_v62 = vld [vmem:[%s2608_s29] sm:$0xff] }
  0x96   : > { %1019 = vperm.xlu2 %2202, %v949_v33   ;;  %811 = vmatpush.msra.mxu0 %v794_v34  ;;  %v770_v63 = vld [vmem:[%s2608_s29 + $0x60] sm:$0xff]  ;;  %v945_v0 = vld [vmem:[%s2613_s12 + $0x48] sm:$0xff]  ;;  %v942_v5 = vld [vmem:[%s2613_s12 + $0x30] sm:$0xff] }
  0x97   : > { %2056 = vmatpush.msra.mxu2 %v794_v34  ;;  %876 = vmatpush.msra.mxu1 %v795_v35  ;;  %v944_v1 = vld [vmem:[%s2613_s12 + $0x40] sm:$0xff]  ;;  %v759_v3 = vld [vmem:[%s2608_s29 + $0x8] sm:$0xff]  ;;  %v943_v7 = vld [vmem:[%s2613_s12 + $0x38] sm:$0xff] }
  0x98   : > { %2072 = vmatpush.msra.mxu3 %v795_v35  ;;  %812 = vmatpush.msra.mxu0 %v792_v36  ;;  %v1064_v2 = vld [vmem:[%s2618_s14 + $0x40] sm:$0xff]  ;;  %v771_v4 = vld [vmem:[%s2608_s29 + $0x68] sm:$0xff]  ;;  %v760_v8 = vld [vmem:[%s2608_s29 + $0x10] sm:$0xff] }
  0x99   : > { %2057 = vmatpush.msra.mxu2 %v792_v36  ;;  %877 = vmatpush.msra.mxu1 %v793_v37  ;;  %v1065_v6 = vld [vmem:[%s2618_s14 + $0x48] sm:$0xff]  ;;  %v772_v9 = vld [vmem:[%s2608_s29 + $0x70] sm:$0xff]  ;;  %v1063_v10 = vld [vmem:[%s2618_s14 + $0x38] sm:$0xff] }
  0x9a   : > { %2073 = vmatpush.msra.mxu3 %v793_v37  ;;  %813 = vmatpush.msra.mxu0 %v790_v38  ;;  %v1062_v11 = vld [vmem:[%s2618_s14 + $0x30] sm:$0xff]  ;;  %v940_v12 = vld [vmem:[%s2613_s12 + $0x20] sm:$0xff]  ;;  %v761_v13 = vld [vmem:[%s2608_s29 + $0x18] sm:$0xff] }
  0x9b   : > { %2058 = vmatpush.msra.mxu2 %v790_v38  ;;  %878 = vmatpush.msra.mxu1 %v791_v39  ;;  %v773_v14 = vld [vmem:[%s2608_s29 + $0x78] sm:$0xff]  ;;  %v1060_v15 = vld [vmem:[%s2618_s14 + $0x20] sm:$0xff]  ;;  %v941_v16 = vld [vmem:[%s2613_s12 + $0x28] sm:$0xff] }
  0x9c   : > { %2074 = vmatpush.msra.mxu3 %v791_v39  ;;  %814 = vmatpush.msra.mxu0 %v788_v40  ;;  %v1061_v17 = vld [vmem:[%s2618_s14 + $0x28] sm:$0xff]  ;;  %v762_v18 = vld [vmem:[%s2608_s29 + $0x20] sm:$0xff]  ;;  %v939_v19 = vld [vmem:[%s2613_s12 + $0x18] sm:$0xff] }
  0x9d   : > { %2059 = vmatpush.msra.mxu2 %v788_v40  ;;  %879 = vmatpush.msra.mxu1 %v789_v41  ;;  %v938_v20 = vld [vmem:[%s2613_s12 + $0x10] sm:$0xff]  ;;  %v763_v22 = vld [vmem:[%s2608_s29 + $0x28] sm:$0xff]  ;;  %v936_v23 = vld [vmem:[%s2613_s12] sm:$0xff] }
  0x9e   : > { %2075 = vmatpush.msra.mxu3 %v789_v41  ;;  %1139 = vperm.xlu1 %2201, %v1069_v42   ;;  %v1058_v21 = vld [vmem:[%s2618_s14 + $0x10] sm:$0xff]  ;;  %v1059_v24 = vld [vmem:[%s2618_s14 + $0x18] sm:$0xff]  ;;  %v937_v25 = vld [vmem:[%s2613_s12 + $0x8] sm:$0xff] }
  0x9f   : > { %1134 = vperm.xlu0 %2200, %v1068_v43   ;;  %1004 = vperm.xlu2 %2202, %v946_v44   ;;  %v764_v26 = vld [vmem:[%s2608_s29 + $0x30] sm:$0xff]  ;;  %v1057_v27 = vld [vmem:[%s2618_s14 + $0x8] sm:$0xff]  ;;  %v1056_v28 = vld [vmem:[%s2618_s14] sm:$0xff] }
  0xa0   : > { %815 = vmatpush.msra.mxu0 %v786_v45  ;;  %2060 = vmatpush.msra.mxu2 %v786_v45  ;;  %v765_v29 = vld [vmem:[%s2608_s29 + $0x38] sm:$0xff]  ;;  %v766_v31 = vld [vmem:[%s2608_s29 + $0x40] sm:$0xff]  ;;  %v767_v32 = vld [vmem:[%s2608_s29 + $0x48] sm:$0xff] }
  0xa1   : > { %880 = vmatpush.msra.mxu1 %v787_v46  ;;  %2076 = vmatpush.msra.mxu3 %v787_v46  ;;  %v768_v34 = vld [vmem:[%s2608_s29 + $0x50] sm:$0xff]  ;;  %v769_v38 = vld [vmem:[%s2608_s29 + $0x58] sm:$0xff] }
  0xa2   : > { %816 = vmatpush.msra.mxu0 %v784_v47  ;;  %2061 = vmatpush.msra.mxu2 %v784_v47 }
  0xa3   : > { %881 = vmatpush.msra.mxu1 %v785_v48  ;;  %2077 = vmatpush.msra.mxu3 %v785_v48 }
  0xa4   : > { %817 = vmatpush.msra.mxu0 %v782_v49  ;;  %2062 = vmatpush.msra.mxu2 %v782_v49 }
  0xa5   : > { %882 = vmatpush.msra.mxu1 %v783_v50  ;;  %2078 = vmatpush.msra.mxu3 %v783_v50 }
  0xa6   : > { %818 = vmatpush.msra.mxu0 %v780_v51  ;;  %2063 = vmatpush.msra.mxu2 %v780_v51 }
  0xa7   : > { %883 = vmatpush.msra.mxu1 %v781_v52  ;;  %2079 = vmatpush.msra.mxu3 %v781_v52 }
  0xa8   : > { %1124 = vperm.xlu1 %2201, %v1066_v53   ;;  %1009 = vperm.xlu0 %2200, %v947_v54  }
  0xa9   : > { %1129 = vperm.xlu2 %2202, %v1067_v55   ;;  %819 = vmatpush.msra.mxu0 %v778_v56 }
  0xaa   : > { %2064 = vmatpush.msra.mxu2 %v778_v56  ;;  %884 = vmatpush.msra.mxu1 %v779_v57 }
  0xab   : > { %2080 = vmatpush.msra.mxu3 %v779_v57  ;;  %820 = vmatpush.msra.mxu0 %v776_v58 }
  0xac   : > { %2065 = vmatpush.msra.mxu2 %v776_v58  ;;  %885 = vmatpush.msra.mxu1 %v777_v59 }
  0xad   : > { %2081 = vmatpush.msra.mxu3 %v777_v59  ;;  %821 = vmatpush.msra.mxu0 %v774_v60 }
  0xae   : > { %2066 = vmatpush.msra.mxu2 %v774_v60  ;;  %886 = vmatpush.msra.mxu1 %v775_v61 }
  0xaf   : > { %2082 = vmatpush.msra.mxu3 %v775_v61  ;;  %822 = vmatmul.f32.vlgmr.msra.gmra.mxu0 %v758_v62 }
  0xb0   : > { %858 = vmatmul.f32.vlgmr.msra.gmra.mxu2 %v770_v63  ;;  %887 = vmatmul.f32.vlgmr.msra.gmra.mxu1 %v758_v62 }
  0xb1   : > { %923 = vmatmul.f32.vlgmr.msra.gmra.mxu3 %v770_v63  ;;  %999 = vperm.xlu1 %2201, %v945_v0  }
  0xb2   : > { %994 = vperm.xlu0 %2200, %v944_v1   ;;  %1114 = vperm.xlu2 %2202, %v1064_v2  }
  0xb7   : > { %825 = vmatmul.f32.gmra.mxu0 %v759_v3 }
  0xb8   : > { %861 = vmatmul.f32.gmra.mxu2 %v771_v4  ;;  %890 = vmatmul.f32.gmra.mxu1 %v759_v3 }
  0xb9   : > { %926 = vmatmul.f32.gmra.mxu3 %v771_v4  ;;  %984 = vperm.xlu1 %2201, %v942_v5  }
  0xba   : > { %1119 = vperm.xlu0 %2200, %v1065_v6   ;;  %989 = vperm.xlu2 %2202, %v943_v7  }
  0xbf   : > { %828 = vmatmul.f32.gmra.mxu0 %v760_v8 }
  0xc0   : > { %864 = vmatmul.f32.gmra.mxu2 %v772_v9  ;;  %893 = vmatmul.f32.gmra.mxu1 %v760_v8 }
  0xc1   : > { %929 = vmatmul.f32.gmra.mxu3 %v772_v9  ;;  %1109 = vperm.xlu1 %2201, %v1063_v10  }
  0xc2   : > { %1104 = vperm.xlu0 %2200, %v1062_v11   ;;  %974 = vperm.xlu2 %2202, %v940_v12  }
  0xc7   : > { %831 = vmatmul.f32.gmra.mxu0 %v761_v13 }
  0xc8   : > { %867 = vmatmul.f32.gmra.mxu2 %v773_v14  ;;  %896 = vmatmul.f32.gmra.mxu1 %v761_v13 }
  0xc9   : > { %932 = vmatmul.f32.gmra.mxu3 %v773_v14  ;;  %1094 = vperm.xlu1 %2201, %v1060_v15  }
  0xca   : > { %979 = vperm.xlu0 %2200, %v941_v16   ;;  %1099 = vperm.xlu2 %2202, %v1061_v17  }
  0xcf   : > { %834 = vmatmul.f32.gmra.mxu0 %v762_v18 }
  0xd0   : > { %899 = vmatmul.f32.gmra.mxu1 %v762_v18 }
  0xd1   : > { %969 = vperm.xlu1 %2201, %v939_v19  }
  0xd2   : > { %964 = vperm.xlu0 %2200, %v938_v20   ;;  %1084 = vperm.xlu2 %2202, %v1058_v21  }
  0xd7   : > { %837 = vmatmul.f32.gmra.mxu0 %v763_v22 }
  0xd8   : > { %902 = vmatmul.f32.gmra.mxu1 %v763_v22 }
  0xd9   : > { %954 = vperm.xlu1 %2201, %v936_v23  }
  0xda   : > { %1089 = vperm.xlu0 %2200, %v1059_v24   ;;  %959 = vperm.xlu2 %2202, %v937_v25  }
  0xdf   : > { %840 = vmatmul.f32.gmra.mxu0 %v764_v26 }
  0xe0   : > { %905 = vmatmul.f32.gmra.mxu1 %v764_v26 }
  0xe1   : > { %1079 = vperm.xlu1 %2201, %v1057_v27  }
  0xe2   : > { %1074 = vperm.xlu0 %2200, %v1056_v28  }
  0xe6   : > { %v1015_v30 = vpop.permute.xlu2 %1014 }
  0xe7   : > { %843 = vmatmul.f32.gmra.mxu0 %v765_v29 }
  0xe8   : > { %908 = vmatmul.f32.gmra.mxu1 %v765_v29 }
  0xef   : > { %846 = vmatmul.f32.gmra.mxu0 %v766_v31 }
  0xf0   : > { %911 = vmatmul.f32.gmra.mxu1 %v766_v31  ;;  %v1020_v33 = vpop.permute.xlu2 %1019 }
  0xf7   : > { %849 = vmatmul.f32.gmra.mxu0 %v767_v32 }
  0xf8   : > { %914 = vmatmul.f32.gmra.mxu1 %v767_v32 }
  0xf9   : > { %v2685_v37 = vpop.permute.xlu2 %1004 }
  0xfd   : > { %v1145_v35 = vpop.permute.xlu1 %1144 }
  0xfe   : > { %v1025_v36 = vpop.permute.xlu0 %1024 }
  0xff   : > { %852 = vmatmul.f32.gmra.mxu0 %v768_v34 }
 0x100   : > { %917 = vmatmul.f32.gmra.mxu1 %v768_v34 }
 0x103   : > { %v2688_v41 = vpop.permute.xlu2 %1129 }
 0x107   : > { %855 = vmatmul.f32.gmra.mxu0 %v769_v38  ;;  %v1150_v39 = vpop.permute.xlu1 %1149  ;;  %v1030_v40 = vpop.permute.xlu0 %1029 }
 0x108   : > { %920 = vmatmul.f32.gmra.mxu1 %v769_v38 }
 0x10c   : > { %v2690_v44 = vpop.permute.xlu2 %1114 }
 0x110   : > { %v1140_v42 = vpop.permute.xlu1 %1139 }
 0x111   : > { %v1135_v43 = vpop.permute.xlu0 %1134 }
 0x114   : > { %v2696_v47 = vpop.permute.xlu2 %989 }
 0x11a   : > { %v2692_v45 = vpop.permute.xlu1 %1124  ;;  %v2694_v46 = vpop.permute.xlu0 %1009 }
 0x11c   : > { %v2702_v50 = vpop.permute.xlu2 %974 }
 0x123   : > { %v2698_v48 = vpop.permute.xlu1 %999 }
 0x124   : > { %v2700_v49 = vpop.permute.xlu0 %994  ;;  %v2708_v55 = vpop.permute.xlu2 %1099 }
 0x12b   : > { %v2704_v51 = vpop.permute.xlu1 %984 }
 0x12c   : > { %v2706_v52 = vpop.permute.xlu0 %1119  ;;  %v823_v53 = vpop.f32.mrf.mxu0 }
 0x12d   : > { %v888_v54 = vpop.f32.mrf.mxu1  ;;  %v1085_v3 = vpop.permute.xlu2 %1084 }
 0x133   : > { %v859_v56 = vpop.f32.mrf.mxu2  ;;  %v2710_v57 = vpop.permute.xlu1 %1109 }
 0x134   : > { %v924_v58 = vpop.f32.mrf.mxu3  ;;  %v2712_v59 = vpop.permute.xlu0 %1104  ;;  %v1044_v15 = vmul.f32 %v1015_v30, %v859_v56 }
 0x135   : > { %v826_v60 = vpop.f32.mrf.mxu0  ;;  %v891_v61 = vpop.f32.mrf.mxu1  ;;  %v1164_v34 = vmul.f32 %v1135_v43, %v924_v58 }
 0x136   : > { %v960_v13 = vpop.permute.xlu2 %959 }
 0x137   : > { %v2724_v16 = vmul.f32 %v960_v13, %v826_v60 }
 0x13b   : > { %v862_v62 = vpop.f32.mrf.mxu2  ;;  %v2714_v63 = vpop.permute.xlu1 %1094 }
 0x13c   : > { %v927_v0 = vpop.f32.mrf.mxu3  ;;  %v2716_v1 = vpop.permute.xlu0 %979  ;;  %v1045_v19 = vmul.f32 %v1020_v33, %v862_v62 }
 0x13d   : > { %v829_v2 = vpop.f32.mrf.mxu0  ;;  %v894_v4 = vpop.f32.mrf.mxu1  ;;  %v1165_v33 = vmul.f32 %v1140_v42, %v927_v0 }
 0x13e   : > { %v2728_v25 = vmul.f32 %v1085_v3, %v894_v4 }
 0x143   : > { %v865_v5 = vpop.f32.mrf.mxu2  ;;  %v970_v6 = vpop.permute.xlu1 %969 }
 0x144   : > { %v930_v7 = vpop.f32.mrf.mxu3  ;;  %v965_v8 = vpop.permute.xlu0 %964  ;;  %v1046_v20 = vmul.f32 %v1025_v36, %v865_v5 }
 0x145   : > { %v2718_v9 = vmul.f32 %v965_v8, %v829_v2  ;;  %v832_v10 = vpop.f32.mrf.mxu0  ;;  %v897_v12 = vpop.f32.mrf.mxu1  ;;  %v1166_v26 = vmul.f32 %v1145_v35, %v930_v7  ;;  %v1174_v35 = vpack.c.bf16 %v1165_v33, %v1164_v34  ;;  %v1262_v34 = vld [vmem:[#allocation2 + $0x18] sm:$0xff] }
 0x146   : > { %v2720_v11 = vmul.f32 %v970_v6, %v832_v10 }
 0x148   : > { %v1049_v14 = vpack.c.bf16 %v2720_v11, %v2718_v9  ;;  %v2045_v9 = vld [vmem:[%s2588_s10 + $0x18] sm:$0xff] }
 0x149   : > { %v2049_v11 = vld [vmem:[%s2590_s13 + $0x18] sm:$0xff] }
 0x14b   : > { %v868_v17 = vpop.f32.mrf.mxu2  ;;  %v955_v18 = vpop.permute.xlu1 %954 }
 0x14c   : > { %v1047_v21 = vmul.f32 %v1030_v40, %v868_v17  ;;  %v933_v22 = vpop.f32.mrf.mxu3  ;;  %v1090_v23 = vpop.permute.xlu0 %1089  ;;  %v2726_v24 = vmul.f32 %v955_v18, %v823_v53  ;;  %v1054_v40 = vpack.c.bf16 %v1045_v19, %v1044_v15 }
 0x14d   : > { %v1167_v27 = vmul.f32 %v1150_v39, %v933_v22  ;;  %v2730_v28 = vmul.f32 %v1090_v23, %v897_v12  ;;  %v835_v29 = vpop.f32.mrf.mxu0  ;;  %v900_v31 = vpop.f32.mrf.mxu1 }
 0x14e   : > { %v1055_v30 = vpack.c.bf16 %v1047_v21, %v1046_v20  ;;  %v1048_v32 = vpack.c.bf16 %v2724_v16, %v2726_v24 }
 0x14f   : > { %v1175_v36 = vpack.c.bf16 %v1167_v27, %v1166_v26  ;;  %v1169_v38 = vpack.c.bf16 %v2730_v28, %v2728_v25  ;;  %v2044_v27 = vld [vmem:[%s2588_s10 + $0x10] sm:$0xff] }
 0x150   : > { %1216 = vmatpush.bf16.msrb.mxu2 %v1055_v30  ;;  %v2048_v28 = vld [vmem:[%s2590_s13 + $0x10] sm:$0xff] }
 0x151   : > { %1301 = vmatpush.bf16.msrb.mxu3 %v1175_v36 }
 0x153   : > { %v1080_v53 = vpop.permute.xlu1 %1079 }
 0x154   : > { %v1075_v39 = vpop.permute.xlu0 %1074  ;;  %v1153_v56 = vmul.f32 %v1080_v53, %v891_v61  ;;  %1217 = vmatpush.bf16.msrb.mxu2 %v1054_v40  ;;  %v1178_v53 = vld [vmem:[#allocation2 + $0x50] sm:$0xff] }
 0x155   : > { %v1152_v60 = vmul.f32 %v1075_v39, %v888_v54  ;;  %1302 = vmatpush.bf16.msrb.mxu3 %v1174_v35  ;;  %v838_v62 = vpop.f32.mrf.mxu0  ;;  %v903_v2 = vpop.f32.mrf.mxu1  ;;  %v1263_v35 = vld [vmem:[#allocation2 + $0x68] sm:$0xff] }
 0x157   : > { %v1168_v3 = vpack.c.bf16 %v1153_v56, %v1152_v60 }
 0x15d   : > { %v841_v4 = vpop.f32.mrf.mxu0  ;;  %v906_v43 = vpop.f32.mrf.mxu1 }
 0x165   : > { %v844_v42 = vpop.f32.mrf.mxu0  ;;  %v909_v58 = vpop.f32.mrf.mxu1 }
 0x166   : > { %v1159_v25 = vmul.f32 %v2710_v57, %v909_v58  ;;  %v1156_v57 = vmul.f32 %v2714_v63, %v900_v31  ;;  %v2043_v63 = vld [vmem:[%s2588_s10 + $0x8] sm:$0xff] }
 0x16d   : > { %v847_v0 = vpop.f32.mrf.mxu0  ;;  %v912_v5 = vpop.f32.mrf.mxu1 }
 0x16e   : > { %v1040_v22 = vmul.f32 %v2700_v49, %v847_v0  ;;  %v1160_v23 = vmul.f32 %v2690_v44, %v912_v5  ;;  %v1157_v44 = vmul.f32 %v2708_v55, %v903_v2  ;;  %v2046_v55 = vld [vmem:[%s2590_s13] sm:$0xff]  ;;  %v1179_v2 = vld [vmem:[#allocation2 + $0x8] sm:$0xff] }
 0x16f   : > { %v1180_v0 = vld [vmem:[#allocation2 + $0x40] sm:$0xff] }
 0x170   : > { %v1265_v5 = vld [vmem:[#allocation2 + $0x20] sm:$0xff] }
 0x175   : > { %v850_v6 = vpop.f32.mrf.mxu0  ;;  %v915_v7 = vpop.f32.mrf.mxu1 }
 0x176   : > { %v1041_v18 = vmul.f32 %v2698_v48, %v850_v6  ;;  %v1161_v20 = vmul.f32 %v2706_v52, %v915_v7  ;;  %v1158_v48 = vmul.f32 %v2712_v59, %v906_v43  ;;  %v1037_v52 = vmul.f32 %v2716_v1, %v838_v62  ;;  %v2047_v1 = vld [vmem:[%s2590_s13 + $0x8] sm:$0xff] }
 0x177   : > { %v1170_v59 = vpack.c.bf16 %v1157_v44, %v1156_v57 }
 0x178   : > { %v1171_v26 = vpack.c.bf16 %v1159_v25, %v1158_v48 }
 0x17d   : > { %v853_v8 = vpop.f32.mrf.mxu0  ;;  %v918_v10 = vpop.f32.mrf.mxu1 }
 0x17e   : > { %v1042_v13 = vmul.f32 %v2685_v37, %v853_v8  ;;  %v1162_v15 = vmul.f32 %v2692_v45, %v918_v10  ;;  %v1039_v37 = vmul.f32 %v2696_v47, %v844_v42  ;;  %v1172_v45 = vpack.c.bf16 %v1161_v20, %v1160_v23 }
 0x17f   : > { %v1036_v47 = vmul.f32 %v2702_v50, %v835_v29  ;;  %v2042_v50 = vld [vmem:[%s2588_s10] sm:$0xff] }
 0x180   : > { %v1261_v29 = vld [vmem:[#allocation2] sm:$0xff] }
 0x185   : > { %v856_v12 = vpop.f32.mrf.mxu0  ;;  %v921_v54 = vpop.f32.mrf.mxu1 }
 0x186   : > { %v1043_v61 = vmul.f32 %v2694_v46, %v856_v12  ;;  %v1163_v17 = vmul.f32 %v2688_v41, %v921_v54  ;;  %v1052_v46 = vpack.c.bf16 %v1041_v18, %v1040_v22  ;;  %v1038_v41 = vmul.f32 %v2704_v51, %v841_v4  ;;  %v1181_v12 = vld [vmem:[#allocation2 + $0x10] sm:$0xff]  ;;  %v1182_v18 = vld [vmem:[#allocation2 + $0x60] sm:$0xff] }
 0x187   : > { %v1050_v51 = vpack.c.bf16 %v1037_v52, %v1036_v47 }
 0x188   : > { %v1053_v19 = vpack.c.bf16 %v1043_v61, %v1042_v13  ;;  %v1173_v21 = vpack.c.bf16 %v1163_v17, %v1162_v15  ;;  %v1051_v49 = vpack.c.bf16 %v1039_v37, %v1038_v41  ;;  %v1266_v13 = vld [vmem:[#allocation2 + $0x38] sm:$0xff] }
 0x189   : > { %v1183_v37 = vld [vmem:[#allocation2 + $0x78] sm:$0xff] }
 0x18a   : > { %1218 = vmatpush.bf16.msrb.mxu2 %v1053_v19  ;;  %1303 = vmatpush.bf16.msrb.mxu3 %v1173_v21  ;;  %v1267_v19 = vld [vmem:[#allocation2 + $0x70] sm:$0xff] }
 0x18e   : > { %1219 = vmatpush.bf16.msrb.mxu2 %v1052_v46  ;;  %1304 = vmatpush.bf16.msrb.mxu3 %v1172_v45  ;;  %v1268_v46 = vld [vmem:[#allocation2 + $0x28] sm:$0xff] }
 0x192   : > { %1220 = vmatpush.bf16.msrb.mxu2 %v1051_v49  ;;  %1305 = vmatpush.bf16.msrb.mxu3 %v1171_v26 }
 0x196   : > { %1221 = vmatpush.bf16.msrb.mxu2 %v1050_v51  ;;  %1306 = vmatpush.bf16.msrb.mxu3 %v1170_v59 }
 0x19a   : > { %1222 = vmatpush.bf16.msrb.mxu2 %v1049_v14  ;;  %1307 = vmatpush.bf16.msrb.mxu3 %v1169_v38  ;;  %v1176_v14 = vld [vmem:[#allocation2 + $0x30] sm:$0xff] }
 0x19e   : > { %1223 = vmatpush.bf16.msrb.mxu2 %v1048_v32  ;;  %1308 = vmatpush.bf16.msrb.mxu3 %v1168_v3  ;;  %v1177_v32 = vld [vmem:[#allocation2 + $0x58] sm:$0xff]  ;;  %v1264_v3 = vld [vmem:[#allocation2 + $0x48] sm:$0xff] }
 0x1a1   : > { %1224 = vmatmul.bf16.vlgmr.msrb.gmra.mxu2 %v2042_v50  ;;  %1309 = vmatmul.bf16.vlgmr.msrb.gmra.mxu3 %v2046_v55 }
 0x1b1   : > { %1229 = vmatmul.bf16.gmra.mxu2 %v2043_v63  ;;  %1314 = vmatmul.bf16.gmra.mxu3 %v2047_v1 }
 0x1c1   : > { %1234 = vmatmul.bf16.gmra.mxu2 %v2044_v27  ;;  %1319 = vmatmul.bf16.gmra.mxu3 %v2048_v28 }
 0x1d1   : > { %1239 = vmatmul.bf16.gmra.mxu2 %v2045_v9  ;;  %1324 = vmatmul.bf16.gmra.mxu3 %v2049_v11 }
 0x224   : > { %v1225_v16 = vpop.f32.mrf.mxu2  ;;  %v1310_v31 = vpop.f32.mrf.mxu3 }
 0x225   : > { %v1245_v24 = vadd.f32 %v1225_v16, %v1176_v14  ;;  %v1330_v30 = vadd.f32 %v1310_v31, %v1261_v29 }
 0x227   : > { %1253 = vst [vmem:[#allocation2 + $0x30] sm:$0xff] %v1245_v24 }
 0x228   : > { %1338 = vst [vmem:[#allocation2] sm:$0xff] %v1330_v30 }
 0x22c   : > { %v1227_v33 = vpop.f32.mrf.mxu2  ;;  %v1312_v38 = vpop.f32.mrf.mxu3 }
 0x22d   : > { %v1246_v36 = vadd.f32 %v1227_v33, %v1177_v32  ;;  %v1331_v40 = vadd.f32 %v1312_v38, %v1262_v34 }
 0x22f   : > { %1254 = vst [vmem:[#allocation2 + $0x58] sm:$0xff] %v1246_v36 }
 0x230   : > { %1339 = vst [vmem:[#allocation2 + $0x18] sm:$0xff] %v1331_v40 }
 0x234   : > { %v1230_v39 = vpop.f32.mrf.mxu2  ;;  %v1315_v60 = vpop.f32.mrf.mxu3 }
 0x235   : > { %v1247_v56 = vadd.f32 %v1230_v39, %v1178_v53  ;;  %v1332_v62 = vadd.f32 %v1315_v60, %v1263_v35 }
 0x237   : > { %1255 = vst [vmem:[#allocation2 + $0x50] sm:$0xff] %v1247_v56 }
 0x238   : > { %1340 = vst [vmem:[#allocation2 + $0x68] sm:$0xff] %v1332_v62 }
 0x23c   : > { %v1232_v4 = vpop.f32.mrf.mxu2  ;;  %v1317_v42 = vpop.f32.mrf.mxu3 }
 0x23d   : > { %v1248_v43 = vadd.f32 %v1232_v4, %v1179_v2  ;;  %v1333_v58 = vadd.f32 %v1317_v42, %v1264_v3 }
 0x23f   : > { %1256 = vst [vmem:[#allocation2 + $0x8] sm:$0xff] %v1248_v43 }
 0x240   : > { %1341 = vst [vmem:[#allocation2 + $0x48] sm:$0xff] %v1333_v58 }
 0x244   : > { %v1235_v6 = vpop.f32.mrf.mxu2  ;;  %v1320_v8 = vpop.f32.mrf.mxu3 }
 0x245   : > { %v1249_v7 = vadd.f32 %v1235_v6, %v1180_v0  ;;  %v1334_v10 = vadd.f32 %v1320_v8, %v1265_v5 }
 0x247   : > { %1257 = vst [vmem:[#allocation2 + $0x40] sm:$0xff] %v1249_v7 }
 0x248   : > { %1342 = vst [vmem:[#allocation2 + $0x20] sm:$0xff] %v1334_v10 }
 0x24c   : > { %v1237_v61 = vpop.f32.mrf.mxu2  ;;  %v1322_v15 = vpop.f32.mrf.mxu3 }
 0x24d   : > { %v1250_v54 = vadd.f32 %v1237_v61, %v1181_v12  ;;  %v1335_v17 = vadd.f32 %v1322_v15, %v1266_v13 }
 0x24f   : > { %1258 = vst [vmem:[#allocation2 + $0x10] sm:$0xff] %v1250_v54 }
 0x250   : > { %1343 = vst [vmem:[#allocation2 + $0x38] sm:$0xff] %v1335_v17 }
 0x254   : > { %v1240_v20 = vpop.f32.mrf.mxu2  ;;  %v1325_v22 = vpop.f32.mrf.mxu3 }
 0x255   : > { %v1251_v21 = vadd.f32 %v1240_v20, %v1182_v18  ;;  %v1336_v23 = vadd.f32 %v1325_v22, %v1267_v19 }
 0x257   : > { %1259 = vst [vmem:[#allocation2 + $0x60] sm:$0xff] %v1251_v21 }
 0x258   : > { %1344 = vst [vmem:[#allocation2 + $0x70] sm:$0xff] %v1336_v23 }
 0x25c   : > { %v1242_v25 = vpop.f32.mrf.mxu2  ;;  %v1327_v41 = vpop.f32.mrf.mxu3  ;;  %1349 = sbr.rel (%p2034_p10) target bundleno = 966 (0x3c6), region = 162 }
 0x25d   : > { %v1252_v45 = vadd.f32 %v1242_v25, %v1183_v37  ;;  %v1337_v48 = vadd.f32 %v1327_v41, %v1268_v46 }
 0x25f   : > { %1260 = vst [vmem:[#allocation2 + $0x78] sm:$0xff] %v1252_v45 }
 0x260   : > { %1345 = vst [vmem:[#allocation2 + $0x28] sm:$0xff] %v1337_v48 }
 0x261   : > { %v1388_v52 = vld [vmem:[#allocation5 + $0xf0] sm:$0xff]  ;;  %v1389_v49 = vld [vmem:[#allocation5 + $0xf8] sm:$0xff]  ;;  %v1472_v44 = vld [vmem:[%s2628_s25] sm:$0xff]  ;;  %v2395_v26 = vmov 0  }
 0x262   : > { %2203 = vset.pattern.permute.xlu0 %v2395_v26  ;;  %1390 = vmatpush.msra.mxu0 %v1388_v52  ;;  %v1386_v47 = vld [vmem:[#allocation5 + $0xe0] sm:$0xff]  ;;  %v1387_v57 = vld [vmem:[#allocation5 + $0xe8] sm:$0xff]  ;;  %v1384_v51 = vld [vmem:[#allocation5 + $0xd0] sm:$0xff] }
 0x263   : > { %1431 = vmatpush.msra.mxu1 %v1389_v49  ;;  %1490 = vperm.xlu0 %2203, %v1472_v44   ;;  %v1385_v59 = vld [vmem:[#allocation5 + $0xd8] sm:$0xff]  ;;  %v1382_v50 = vld [vmem:[#allocation5 + $0xc0] sm:$0xff]  ;;  %v1473_v55 = vld [vmem:[%s2628_s25 + $0x8] sm:$0xff] }
 0x264   : > { %1391 = vmatpush.msra.mxu0 %v1386_v47  ;;  %2204 = vset.pattern.permute.xlu1 %v2395_v26  ;;  %v1383_v63 = vld [vmem:[#allocation5 + $0xc8] sm:$0xff]  ;;  %v1380_v1 = vld [vmem:[#allocation5 + $0xb0] sm:$0xff]  ;;  %v1381_v27 = vld [vmem:[#allocation5 + $0xb8] sm:$0xff] }
 0x265   : > { %1432 = vmatpush.msra.mxu1 %v1387_v57  ;;  %2205 = vset.pattern.permute.xlu2 %v2395_v26  ;;  %v1552_v28 = vld [vmem:[%s2633_s24] sm:$0xff]  ;;  %v1379_v11 = vld [vmem:[#allocation5 + $0xa8] sm:$0xff]  ;;  %v1376_v14 = vld [vmem:[#allocation5 + $0x90] sm:$0xff] }
 0x266   : > { %1392 = vmatpush.msra.mxu0 %v1384_v51  ;;  %1495 = vperm.xlu1 %2204, %v1473_v55   ;;  %v1378_v9 = vld [vmem:[#allocation5 + $0xa0] sm:$0xff]  ;;  %v1553_v29 = vld [vmem:[%s2633_s24 + $0x8] sm:$0xff]  ;;  %v1377_v16 = vld [vmem:[#allocation5 + $0x98] sm:$0xff] }
 0x267   : > { %1433 = vmatpush.msra.mxu1 %v1385_v59  ;;  %v1374_v24 = vld [vmem:[#allocation5 + $0x80] sm:$0xff]  ;;  %v1375_v31 = vld [vmem:[#allocation5 + $0x88] sm:$0xff]  ;;  %v1372_v30 = vld [vmem:[#allocation5 + $0x70] sm:$0xff] }
 0x268   : > { %1393 = vmatpush.msra.mxu0 %v1382_v50  ;;  %v1474_v32 = vld [vmem:[%s2628_s25 + $0x10] sm:$0xff]  ;;  %v1373_v34 = vld [vmem:[#allocation5 + $0x78] sm:$0xff]  ;;  %v1370_v36 = vld [vmem:[#allocation5 + $0x60] sm:$0xff] }
 0x269   : > { %1434 = vmatpush.msra.mxu1 %v1383_v63  ;;  %v1475_v33 = vld [vmem:[%s2628_s25 + $0x18] sm:$0xff]  ;;  %1500 = vperm.xlu2 %2205, %v1474_v32   ;;  %v1371_v38 = vld [vmem:[#allocation5 + $0x68] sm:$0xff]  ;;  %v1368_v40 = vld [vmem:[#allocation5 + $0x50] sm:$0xff] }
 0x26a   : > { %1394 = vmatpush.msra.mxu0 %v1380_v1  ;;  %v1555_v53 = vld [vmem:[%s2633_s24 + $0x18] sm:$0xff]  ;;  %v1366_v39 = vld [vmem:[#allocation5 + $0x40] sm:$0xff]  ;;  %v1554_v56 = vld [vmem:[%s2633_s24 + $0x10] sm:$0xff] }
 0x26b   : > { %1435 = vmatpush.msra.mxu1 %v1381_v27  ;;  %1570 = vperm.xlu0 %2203, %v1552_v28   ;;  %v1369_v35 = vld [vmem:[#allocation5 + $0x58] sm:$0xff]  ;;  %v1367_v60 = vld [vmem:[#allocation5 + $0x48] sm:$0xff]  ;;  %v1364_v62 = vld [vmem:[#allocation5 + $0x30] sm:$0xff] }
 0x26c   : > { %1395 = vmatpush.msra.mxu0 %v1378_v9  ;;  %v1365_v2 = vld [vmem:[#allocation5 + $0x38] sm:$0xff]  ;;  %v1556_v3 = vld [vmem:[%s2633_s24 + $0x20] sm:$0xff]  ;;  %v1363_v43 = vld [vmem:[#allocation5 + $0x28] sm:$0xff] }
 0x26d   : > { %1436 = vmatpush.msra.mxu1 %v1379_v11  ;;  %v1362_v4 = vld [vmem:[#allocation5 + $0x20] sm:$0xff]  ;;  %v1360_v42 = vld [vmem:[#allocation5 + $0x10] sm:$0xff]  ;;  %v1477_v58 = vld [vmem:[%s2628_s25 + $0x28] sm:$0xff] }
 0x26e   : > { %1396 = vmatpush.msra.mxu0 %v1376_v14  ;;  %1575 = vperm.xlu1 %2204, %v1553_v29   ;;  %v1361_v0 = vld [vmem:[#allocation5 + $0x18] sm:$0xff]  ;;  %v1358_v5 = vld [vmem:[#allocation5] sm:$0xff]  ;;  %v1359_v7 = vld [vmem:[#allocation5 + $0x8] sm:$0xff] }
 0x26f   : > { %1437 = vmatpush.msra.mxu1 %v1377_v16  ;;  %v1476_v6 = vld [vmem:[%s2628_s25 + $0x20] sm:$0xff]  ;;  %v1478_v10 = vld [vmem:[%s2628_s25 + $0x30] sm:$0xff]  ;;  %v1557_v13 = vld [vmem:[%s2633_s24 + $0x28] sm:$0xff] }
 0x270   : > { %1397 = vmatpush.msra.mxu0 %v1374_v24  ;;  %v1350_v8 = vld [vmem:[%s2623_s1] sm:$0xff]  ;;  %v1558_v12 = vld [vmem:[%s2633_s24 + $0x30] sm:$0xff]  ;;  %v1351_v61 = vld [vmem:[%s2623_s1 + $0x8] sm:$0xff] }
 0x271   : > { %1438 = vmatpush.msra.mxu1 %v1375_v31  ;;  %1580 = vperm.xlu2 %2205, %v1554_v56   ;;  %v1559_v54 = vld [vmem:[%s2633_s24 + $0x38] sm:$0xff]  ;;  %v1352_v17 = vld [vmem:[%s2623_s1 + $0x10] sm:$0xff]  ;;  %v1354_v19 = vld [vmem:[%s2623_s1 + $0x20] sm:$0xff] }
 0x272   : > { %1398 = vmatpush.msra.mxu0 %v1372_v30  ;;  %v1479_v15 = vld [vmem:[%s2628_s25 + $0x38] sm:$0xff]  ;;  %v1355_v20 = vld [vmem:[%s2623_s1 + $0x28] sm:$0xff]  ;;  %v1356_v21 = vld [vmem:[%s2623_s1 + $0x30] sm:$0xff] }
 0x273   : > { %1439 = vmatpush.msra.mxu1 %v1373_v34  ;;  %1505 = vperm.xlu0 %2203, %v1475_v33   ;;  %v1353_v18 = vld [vmem:[%s2623_s1 + $0x18] sm:$0xff]  ;;  %v1646_v46 = vld [vmem:[#allocation8 + $0x70] sm:$0xff]  ;;  %v1645_v45 = vld [vmem:[#allocation8 + $0x68] sm:$0xff] }
 0x274   : > { %1399 = vmatpush.msra.mxu0 %v1370_v36  ;;  %v1357_v22 = vld [vmem:[%s2623_s1 + $0x38] sm:$0xff]  ;;  %v1662_v25 = vld [vmem:[#allocation8 + $0xf0] sm:$0xff]  ;;  %v1661_v41 = vld [vmem:[#allocation8 + $0xe8] sm:$0xff] }
 0x275   : > { %1440 = vmatpush.msra.mxu1 %v1371_v38  ;;  %v1647_v23 = vld [vmem:[#allocation8 + $0x78] sm:$0xff]  ;;  %v1644_v48 = vld [vmem:[#allocation8 + $0x60] sm:$0xff]  ;;  %v1642_v26 = vld [vmem:[#allocation8 + $0x50] sm:$0xff] }
 0x276   : > { %1400 = vmatpush.msra.mxu0 %v1368_v40  ;;  %1585 = vperm.xlu1 %2204, %v1555_v53   ;;  %v1663_v37 = vld [vmem:[#allocation8 + $0xf8] sm:$0xff]  ;;  %v1660_v52 = vld [vmem:[#allocation8 + $0xe0] sm:$0xff]  ;;  %v1658_v47 = vld [vmem:[#allocation8 + $0xd0] sm:$0xff] }
 0x277   : > { %1441 = vmatpush.msra.mxu1 %v1369_v35  ;;  %1668 = vmatpush.msra.mxu2 %v1647_v23  ;;  %v1643_v49 = vld [vmem:[#allocation8 + $0x58] sm:$0xff]  ;;  %v1641_v57 = vld [vmem:[#allocation8 + $0x48] sm:$0xff]  ;;  %v1640_v59 = vld [vmem:[#allocation8 + $0x40] sm:$0xff] }
 0x278   : > { %1401 = vmatpush.msra.mxu0 %v1366_v39  ;;  %1709 = vmatpush.msra.mxu3 %v1663_v37  ;;  %v1659_v44 = vld [vmem:[#allocation8 + $0xd8] sm:$0xff]  ;;  %v1657_v51 = vld [vmem:[#allocation8 + $0xc8] sm:$0xff]  ;;  %v1656_v50 = vld [vmem:[#allocation8 + $0xc0] sm:$0xff] }
 0x279   : > { %1442 = vmatpush.msra.mxu1 %v1367_v60  ;;  %1510 = vperm.xlu2 %2205, %v1476_v6   ;;  %v1639_v55 = vld [vmem:[#allocation8 + $0x38] sm:$0xff]  ;;  %v1638_v1 = vld [vmem:[#allocation8 + $0x30] sm:$0xff]  ;;  %v1637_v28 = vld [vmem:[#allocation8 + $0x28] sm:$0xff] }
 0x27a   : > { %1402 = vmatpush.msra.mxu0 %v1364_v62  ;;  %1669 = vmatpush.msra.mxu2 %v1646_v46  ;;  %v1655_v63 = vld [vmem:[#allocation8 + $0xb8] sm:$0xff]  ;;  %v1654_v27 = vld [vmem:[#allocation8 + $0xb0] sm:$0xff]  ;;  %v1653_v9 = vld [vmem:[#allocation8 + $0xa8] sm:$0xff] }
 0x27b   : > { %1443 = vmatpush.msra.mxu1 %v1365_v2  ;;  %1590 = vperm.xlu0 %2203, %v1556_v3   ;;  %v1636_v11 = vld [vmem:[#allocation8 + $0x20] sm:$0xff]  ;;  %v1635_v29 = vld [vmem:[#allocation8 + $0x18] sm:$0xff]  ;;  %v1634_v24 = vld [vmem:[#allocation8 + $0x10] sm:$0xff] }
 0x27c   : > { %1403 = vmatpush.msra.mxu0 %v1362_v4  ;;  %1710 = vmatpush.msra.mxu3 %v1662_v25  ;;  %v1652_v14 = vld [vmem:[#allocation8 + $0xa0] sm:$0xff]  ;;  %v1651_v16 = vld [vmem:[#allocation8 + $0x98] sm:$0xff]  ;;  %v1650_v31 = vld [vmem:[#allocation8 + $0x90] sm:$0xff] }
 0x27d   : > { %1444 = vmatpush.msra.mxu1 %v1363_v43  ;;  %1670 = vmatpush.msra.mxu2 %v1645_v45  ;;  %v1633_v30 = vld [vmem:[#allocation8 + $0x8] sm:$0xff]  ;;  %v1632_v34 = vld [vmem:[#allocation8] sm:$0xff]  ;;  %v1480_v53 = vld [vmem:[#allocation2 + $0x30] sm:$0xff] }
 0x27e   : > { %1404 = vmatpush.msra.mxu0 %v1360_v42  ;;  %1515 = vperm.xlu1 %2204, %v1477_v58   ;;  %v1649_v32 = vld [vmem:[#allocation8 + $0x88] sm:$0xff]  ;;  %v1648_v33 = vld [vmem:[#allocation8 + $0x80] sm:$0xff] }
 0x27f   : > { %1445 = vmatpush.msra.mxu1 %v1361_v0  ;;  %1711 = vmatpush.msra.mxu3 %v1661_v41  ;;  %v1560_v60 = vld [vmem:[#allocation2] sm:$0xff]  ;;  %v1481_v0 = vld [vmem:[#allocation2 + $0x58] sm:$0xff] }
 0x280   : > { %1405 = vmatpush.msra.mxu0 %v1358_v5  ;;  %1671 = vmatpush.msra.mxu2 %v1644_v48  ;;  %v1483_v48 = vld [vmem:[#allocation2 + $0x8] sm:$0xff] }
 0x281   : > { %1446 = vmatpush.msra.mxu1 %v1359_v7  ;;  %1406 = vmatmul.f32.vlgmr.msra.gmra.mxu0 %v1350_v8 }
 0x282   : > { %1447 = vmatmul.f32.vlgmr.msra.gmra.mxu1 %v1350_v8  ;;  %1595 = vperm.xlu2 %2205, %v1557_v13   ;;  %v1561_v8 = vld [vmem:[#allocation2 + $0x18] sm:$0xff] }
 0x283   : > { %1520 = vperm.xlu0 %2203, %v1478_v10   ;;  %1712 = vmatpush.msra.mxu3 %v1660_v52 }
 0x284   : > { %1672 = vmatpush.msra.mxu2 %v1643_v49 }
 0x285   : > { %1713 = vmatpush.msra.mxu3 %v1659_v44 }
 0x286   : > { %1600 = vperm.xlu1 %2204, %v1558_v12   ;;  %1673 = vmatpush.msra.mxu2 %v1642_v26  ;;  %v1563_v26 = vld [vmem:[#allocation2 + $0x48] sm:$0xff] }
 0x287   : > { %1714 = vmatpush.msra.mxu3 %v1658_v47 }
 0x288   : > { %1674 = vmatpush.msra.mxu2 %v1641_v57 }
 0x289   : > { %1409 = vmatmul.f32.gmra.mxu0 %v1351_v61  ;;  %1715 = vmatpush.msra.mxu3 %v1657_v51 }
 0x28a   : > { %1450 = vmatmul.f32.gmra.mxu1 %v1351_v61  ;;  %1525 = vperm.xlu2 %2205, %v1479_v15  }
 0x28b   : > { %1605 = vperm.xlu0 %2203, %v1559_v54   ;;  %1675 = vmatpush.msra.mxu2 %v1640_v59 }
 0x28c   : > { %1716 = vmatpush.msra.mxu3 %v1656_v50 }
 0x28d   : > { %1676 = vmatpush.msra.mxu2 %v1639_v55 }
 0x28e   : > { %1717 = vmatpush.msra.mxu3 %v1655_v63 }
 0x28f   : > { %1677 = vmatpush.msra.mxu2 %v1638_v1  ;;  %v1484_v1 = vld [vmem:[#allocation2 + $0x40] sm:$0xff] }
 0x290   : > { %1718 = vmatpush.msra.mxu3 %v1654_v27 }
 0x291   : > { %1412 = vmatmul.f32.gmra.mxu0 %v1352_v17  ;;  %1678 = vmatpush.msra.mxu2 %v1637_v28 }
 0x292   : > { %1453 = vmatmul.f32.gmra.mxu1 %v1352_v17  ;;  %1719 = vmatpush.msra.mxu3 %v1653_v9  ;;  %v1482_v17 = vld [vmem:[#allocation2 + $0x50] sm:$0xff] }
 0x293   : > { %1679 = vmatpush.msra.mxu2 %v1636_v11  ;;  %v1564_v11 = vld [vmem:[#allocation2 + $0x20] sm:$0xff] }
 0x294   : > { %1720 = vmatpush.msra.mxu3 %v1652_v14 }
 0x295   : > { %1680 = vmatpush.msra.mxu2 %v1635_v29 }
 0x296   : > { %1721 = vmatpush.msra.mxu3 %v1651_v16 }
 0x297   : > { %1681 = vmatpush.msra.mxu2 %v1634_v24 }
 0x298   : > { %1722 = vmatpush.msra.mxu3 %v1650_v31 }
 0x299   : > { %1415 = vmatmul.f32.gmra.mxu0 %v1353_v18  ;;  %1682 = vmatpush.msra.mxu2 %v1633_v30 }
 0x29a   : > { %1456 = vmatmul.f32.gmra.mxu1 %v1353_v18  ;;  %1723 = vmatpush.msra.mxu3 %v1649_v32 }
 0x29b   : > { %1683 = vmatpush.msra.mxu2 %v1632_v34  ;;  %v1485_v34 = vld [vmem:[#allocation2 + $0x10] sm:$0xff] }
 0x29c   : > { %1724 = vmatpush.msra.mxu3 %v1648_v33 }
 0x2a1   : > { %1418 = vmatmul.f32.gmra.mxu0 %v1354_v19 }
 0x2a2   : > { %1459 = vmatmul.f32.gmra.mxu1 %v1354_v19 }
 0x2a9   : > { %1421 = vmatmul.f32.gmra.mxu0 %v1355_v20 }
 0x2aa   : > { %1462 = vmatmul.f32.gmra.mxu1 %v1355_v20 }
 0x2b1   : > { %1424 = vmatmul.f32.gmra.mxu0 %v1356_v21 }
 0x2b2   : > { %1465 = vmatmul.f32.gmra.mxu1 %v1356_v21  ;;  %v1562_v21 = vld [vmem:[#allocation2 + $0x68] sm:$0xff] }
 0x2b9   : > { %1427 = vmatmul.f32.gmra.mxu0 %v1357_v22 }
 0x2ba   : > { %1468 = vmatmul.f32.gmra.mxu1 %v1357_v22 }
 0x2c3   : > { %v1501_v42 = vpop.permute.xlu2 %1500 }
 0x2cb   : > { %v1581_v18 = vpop.permute.xlu2 %1580 }
 0x2d3   : > { %v1511_v55 = vpop.permute.xlu2 %1510 }
 0x2d5   : > { %v1491_v36 = vpop.permute.xlu0 %1490 }
 0x2d8   : > { %v1496_v38 = vpop.permute.xlu1 %1495 }
 0x2dc   : > { %v1596_v33 = vpop.permute.xlu2 %1595 }
 0x2dd   : > { %v1571_v35 = vpop.permute.xlu0 %1570 }
 0x2e0   : > { %v1576_v5 = vpop.permute.xlu1 %1575 }
 0x2e5   : > { %v1506_v45 = vpop.permute.xlu0 %1505 }
 0x2e8   : > { %v1586_v52 = vpop.permute.xlu1 %1585 }
 0x2ed   : > { %v1591_v27 = vpop.permute.xlu0 %1590 }
 0x2f0   : > { %v1516_v30 = vpop.permute.xlu1 %1515 }
 0x2fe   : > { %v1407_v40 = vpop.f32.mrf.mxu0 }
 0x2ff   : > { %v1528_v39 = vmul.f32 %v1491_v36, %v1407_v40  ;;  %v1448_v56 = vpop.f32.mrf.mxu1  ;;  %v1565_v40 = vld [vmem:[#allocation2 + $0x38] sm:$0xff] }
 0x300   : > { %v1608_v62 = vmul.f32 %v1571_v35, %v1448_v56 }
 0x301   : > { %v1536_v2 = vadd.f32 %v1528_v39, %v1480_v53 }
 0x302   : > { %v1616_v3 = vadd.f32 %v1608_v62, %v1560_v60  ;;  %v1521_v62 = vpop.permute.xlu0 %1520 }
 0x303   : > { %v1544_v4 = vmul.f32 %v1536_v2, %v1491_v36 }
 0x304   : > { %v1624_v43 = vmul.f32 %v1616_v3, %v1571_v35  ;;  %v1486_v3 = vld [vmem:[#allocation2 + $0x60] sm:$0xff] }
 0x305   : > { %1684 = vmatmul.f32.vlgmr.msra.gmra.mxu2 %v1544_v4  ;;  %v1601_v4 = vpop.permute.xlu1 %1600 }
 0x306   : > { %1725 = vmatmul.f32.vlgmr.msra.gmra.mxu3 %v1624_v43  ;;  %v1410_v58 = vpop.f32.mrf.mxu0 }
 0x307   : > { %v1529_v6 = vmul.f32 %v1496_v38, %v1410_v58  ;;  %v1451_v7 = vpop.f32.mrf.mxu1  ;;  %v1566_v58 = vld [vmem:[#allocation2 + $0x70] sm:$0xff] }
 0x308   : > { %v1609_v10 = vmul.f32 %v1576_v5, %v1451_v7 }
 0x309   : > { %v1537_v12 = vadd.f32 %v1529_v6, %v1481_v0 }
 0x30a   : > { %v1617_v13 = vadd.f32 %v1609_v10, %v1561_v8  ;;  %v1526_v10 = vpop.permute.xlu2 %1525 }
 0x30b   : > { %v1545_v61 = vmul.f32 %v1537_v12, %v1496_v38 }
 0x30c   : > { %v1625_v54 = vmul.f32 %v1617_v13, %v1576_v5  ;;  %v1487_v13 = vld [vmem:[#allocation2 + $0x78] sm:$0xff] }
 0x30d   : > { %1687 = vmatmul.f32.gmra.mxu2 %v1545_v61  ;;  %v1606_v61 = vpop.permute.xlu0 %1605 }
 0x30e   : > { %1728 = vmatmul.f32.gmra.mxu3 %v1625_v54  ;;  %v1413_v15 = vpop.f32.mrf.mxu0 }
 0x30f   : > { %v1530_v19 = vmul.f32 %v1501_v42, %v1413_v15  ;;  %v1454_v20 = vpop.f32.mrf.mxu1 }
 0x310   : > { %v1610_v22 = vmul.f32 %v1581_v18, %v1454_v20 }
 0x311   : > { %v1538_v23 = vadd.f32 %v1530_v19, %v1482_v17  ;;  %v1567_v17 = vld [vmem:[#allocation2 + $0x28] sm:$0xff] }
 0x312   : > { %v1618_v37 = vadd.f32 %v1610_v22, %v1562_v21 }
 0x313   : > { %v1546_v46 = vmul.f32 %v1538_v23, %v1501_v42  ;;  %v2206_v23 = vld [vmem:[%s2908_s2] ss:$0 sm:$0xff] }
 0x314   : > { %v1626_v25 = vmul.f32 %v1618_v37, %v1581_v18 }
 0x315   : > { %1690 = vmatmul.f32.gmra.mxu2 %v1546_v46 }
 0x316   : > { %1731 = vmatmul.f32.gmra.mxu3 %v1626_v25  ;;  %v1416_v41 = vpop.f32.mrf.mxu0 }
 0x317   : > { %v1531_v49 = vmul.f32 %v1506_v45, %v1416_v41  ;;  %v1457_v44 = vpop.f32.mrf.mxu1 }
 0x318   : > { %v1611_v47 = vmul.f32 %v1586_v52, %v1457_v44 }
 0x319   : > { %v1539_v57 = vadd.f32 %v1531_v49, %v1483_v48 }
 0x31a   : > { %v1619_v51 = vadd.f32 %v1611_v47, %v1563_v26 }
 0x31b   : > { %v1547_v59 = vmul.f32 %v1539_v57, %v1506_v45 }
 0x31c   : > { %v1627_v50 = vmul.f32 %v1619_v51, %v1586_v52 }
 0x31d   : > { %1693 = vmatmul.f32.gmra.mxu2 %v1547_v59 }
 0x31e   : > { %1734 = vmatmul.f32.gmra.mxu3 %v1627_v50  ;;  %v1419_v63 = vpop.f32.mrf.mxu0 }
 0x31f   : > { %v1532_v28 = vmul.f32 %v1511_v55, %v1419_v63  ;;  %v1460_v9 = vpop.f32.mrf.mxu1 }
 0x320   : > { %v1612_v14 = vmul.f32 %v1591_v27, %v1460_v9 }
 0x321   : > { %v1540_v29 = vadd.f32 %v1532_v28, %v1484_v1 }
 0x322   : > { %v1620_v16 = vadd.f32 %v1612_v14, %v1564_v11 }
 0x323   : > { %v1548_v24 = vmul.f32 %v1540_v29, %v1511_v55 }
 0x324   : > { %v1628_v31 = vmul.f32 %v1620_v16, %v1591_v27 }
 0x325   : > { %1696 = vmatmul.f32.gmra.mxu2 %v1548_v24 }
 0x326   : > { %1737 = vmatmul.f32.gmra.mxu3 %v1628_v31  ;;  %v1422_v32 = vpop.f32.mrf.mxu0 }
 0x327   : > { %v1533_v36 = vmul.f32 %v1516_v30, %v1422_v32  ;;  %v1463_v38 = vpop.f32.mrf.mxu1 }
 0x328   : > { %v1613_v53 = vmul.f32 %v1596_v33, %v1463_v38 }
 0x329   : > { %v1541_v35 = vadd.f32 %v1533_v36, %v1485_v34 }
 0x32a   : > { %v1621_v39 = vadd.f32 %v1613_v53, %v1565_v40 }
 0x32b   : > { %v1549_v56 = vmul.f32 %v1541_v35, %v1516_v30 }
 0x32c   : > { %v1629_v60 = vmul.f32 %v1621_v39, %v1596_v33 }
 0x32d   : > { %1699 = vmatmul.f32.gmra.mxu2 %v1549_v56 }
 0x32e   : > { %1740 = vmatmul.f32.gmra.mxu3 %v1629_v60  ;;  %v1425_v2 = vpop.f32.mrf.mxu0 }
 0x32f   : > { %v1534_v43 = vmul.f32 %v1521_v62, %v1425_v2  ;;  %v1466_v42 = vpop.f32.mrf.mxu1 }
 0x330   : > { %v1614_v0 = vmul.f32 %v1601_v4, %v1466_v42 }
 0x331   : > { %v1542_v5 = vadd.f32 %v1534_v43, %v1486_v3 }
 0x332   : > { %v1622_v6 = vadd.f32 %v1614_v0, %v1566_v58 }
 0x333   : > { %v1550_v7 = vmul.f32 %v1542_v5, %v1521_v62 }
 0x334   : > { %v1630_v8 = vmul.f32 %v1622_v6, %v1601_v4 }
 0x335   : > { %1702 = vmatmul.f32.gmra.mxu2 %v1550_v7 }
 0x336   : > { %1743 = vmatmul.f32.gmra.mxu3 %v1630_v8  ;;  %v1428_v12 = vpop.f32.mrf.mxu0 }
 0x337   : > { %v1535_v54 = vmul.f32 %v1526_v10, %v1428_v12  ;;  %v1469_v15 = vpop.f32.mrf.mxu1 }
 0x338   : > { %v1615_v18 = vmul.f32 %v1606_v61, %v1469_v15 }
 0x339   : > { %v1543_v19 = vadd.f32 %v1535_v54, %v1487_v13 }
 0x33a   : > { %v1623_v20 = vadd.f32 %v1615_v18, %v1567_v17 }
 0x33b   : > { %v1551_v21 = vmul.f32 %v1543_v19, %v1526_v10 }
 0x33c   : > { %v1631_v22 = vmul.f32 %v1623_v20, %v1606_v61 }
 0x33d   : > { %1705 = vmatmul.f32.gmra.mxu2 %v1551_v21 }
 0x33e   : > { %1746 = vmatmul.f32.gmra.mxu3 %v1631_v22 }
 0x388   : > { %v1685_v37 = vpop.f32.mrf.mxu2 }
 0x389   : > { %v1686_v46 = vadd.f32 %v2206_v23, %v1685_v37  ;;  %v1726_v25 = vpop.f32.mrf.mxu3 }
 0x38b   : > { %v1727_v45 = vadd.f32 %v1726_v25, %v1686_v46 }
 0x38d   : > { %1750 = vst [vmem:[%s2635_s21] sm:$0xff] %v1727_v45 }
 0x390   : > { %v1688_v41 = vpop.f32.mrf.mxu2 }
 0x391   : > { %v1689_v48 = vadd.f32 %v2206_v23, %v1688_v41  ;;  %v1729_v52 = vpop.f32.mrf.mxu3 }
 0x393   : > { %v1730_v49 = vadd.f32 %v1729_v52, %v1689_v48 }
 0x395   : > { %1751 = vst [vmem:[%s2635_s21 + $0x8] sm:$0xff] %v1730_v49 }
 0x398   : > { %v1691_v44 = vpop.f32.mrf.mxu2 }
 0x399   : > { %v1692_v26 = vadd.f32 %v2206_v23, %v1691_v44  ;;  %v1732_v47 = vpop.f32.mrf.mxu3 }
 0x39b   : > { %v1733_v57 = vadd.f32 %v1732_v47, %v1692_v26 }
 0x39d   : > { %1752 = vst [vmem:[%s2635_s21 + $0x10] sm:$0xff] %v1733_v57 }
 0x3a0   : > { %v1694_v51 = vpop.f32.mrf.mxu2 }
 0x3a1   : > { %v1695_v59 = vadd.f32 %v2206_v23, %v1694_v51  ;;  %v1735_v50 = vpop.f32.mrf.mxu3 }
 0x3a3   : > { %v1736_v55 = vadd.f32 %v1735_v50, %v1695_v59 }
 0x3a5   : > { %1753 = vst [vmem:[%s2635_s21 + $0x18] sm:$0xff] %v1736_v55 }
 0x3a8   : > { %v1697_v63 = vpop.f32.mrf.mxu2 }
 0x3a9   : > { %v1698_v1 = vadd.f32 %v2206_v23, %v1697_v63  ;;  %v1738_v27 = vpop.f32.mrf.mxu3 }
 0x3ab   : > { %v1739_v28 = vadd.f32 %v1738_v27, %v1698_v1 }
 0x3ad   : > { %1754 = vst [vmem:[%s2635_s21 + $0x20] sm:$0xff] %v1739_v28 }
 0x3b0   : > { %v1700_v9 = vpop.f32.mrf.mxu2 }
 0x3b1   : > { %v1701_v11 = vadd.f32 %v2206_v23, %v1700_v9  ;;  %v1741_v14 = vpop.f32.mrf.mxu3 }
 0x3b3   : > { %v1742_v29 = vadd.f32 %v1741_v14, %v1701_v11 }
 0x3b5   : > { %1755 = vst [vmem:[%s2635_s21 + $0x28] sm:$0xff] %v1742_v29 }
 0x3b8   : > { %v1703_v16 = vpop.f32.mrf.mxu2 }
 0x3b9   : > { %v1704_v24 = vadd.f32 %v2206_v23, %v1703_v16  ;;  %v1744_v31 = vpop.f32.mrf.mxu3 }
 0x3bb   : > { %v1745_v30 = vadd.f32 %v1744_v31, %v1704_v24 }
 0x3bd   : > { %1756 = vst [vmem:[%s2635_s21 + $0x30] sm:$0xff] %v1745_v30 }
 0x3c0   : > { %v1706_v32 = vpop.f32.mrf.mxu2 }
 0x3c1   : > { %v1707_v34 = vadd.f32 %v2206_v23, %v1706_v32  ;;  %v1747_v33 = vpop.f32.mrf.mxu3 }
 0x3c3   : > { %v1748_v36 = vadd.f32 %v1747_v33, %v1707_v34 }
 0x3c5   : > { %1757 = vst [vmem:[%s2635_s21 + $0x38] sm:$0xff] %v1748_v36 }
 0x3c6 PF: > { %s2050_s4 = sshll.u32 %s2373_s23, 6  ;;  %s2909_s25 = sld [smem:[#allocation33_spill]] }
 0x3c7   : > { %s1771_s20 = sshll.u32 %s2635_s21, 4  ;;  %s2911_s8 = sand.u32 1, %s2353_s18   ;;  %s1772_s20 = int_to_ptr.vmem [resolvable:$true] %s1771_s20 }
 0x3c8   : > { %s1759_s9 = scalar_lea.sflag [#allocation7], %s2911_s8 }
 0x3cc   : > { %s2910_s10 = smov %s2909_s25  ;;  %s1770_s13 = scalar_lea.hbm %s2909_s25, %s2050_s4 }
 0x3cd   : > { %s1773_s6 = sshll.u32 %s1770_s13, 4  ;;  %s2287_s23 = scalar_lea.hbm %s2910_s10, 256  ;;  %s1774_s6 = int_to_ptr.hbm [resolvable:$true] %s1773_s6 }
 0x3ce   : > { %s2281_s29 = sshra.s32 %s1774_s6, 4  ;;  %s2282_s29 = int_to_ptr.hbm [resolvable:$true] %s2281_s29 }
 0x3cf   : > { %s2283_s12 = scalar_lea.hbm %s2282_s29, 64  ;;  %p2288_p1 = scmp.lt.s32.totalorder %s2282_s29, %s2910_s10 }
 0x3d0   : > { %p2284_p11 = scmp.ne.s32.totalorder %s2282_s29, %s2283_s12  ;;  %p2289_p2 = scmp.lt.s32.totalorder %s2287_s23, %s2283_s12 }
 0x3d2   : > { %p2285_p13 = pnand %p2284_p11, %p2530_p7  ;;  %p2290_p4 = por %p2289_p2, %p2288_p1 }
 0x3d4   : > { %p2286_p0 = pneg %p2285_p13 }
 0x3d6   : > { %p2291_p5 = pnand %p2290_p4, %p2286_p0 }
 0x3d8   : > { %2294 = shalt.err (!%p2291_p5)
}
 0x3d9   : > { %s2396_s21 = smov 128   ;;  %s2397_s28 = smov 8  }
 0x3da   : > { %2091 = dma.vmem_to_hbm [thread:$0]  (%p2530_p7), %s1772_s20, 1024, %s1774_s6, %s1759_s9, %s2396_s21, %s2396_s21, %s2397_s28  }
 0x3db PF: > { %p2108_p6 = scmp.ge.s32.totalorder %s2385_s26, 2  ;;  %s1788_s11 = sand.u32 1, %s2349_s17  }
 0x3dc   : > { %s1789_s3 = scalar_lea.sflag [#allocation7], %s1788_s11 }
 0x3dd   : > { %p2101_p3 = pnand %p2108_p6, %p2538_p12 }
 0x3df   : > { %p2102_p8 = pneg %p2101_p3 }
 0x3e1   : > { %2344 = dma.done.wait (%p2102_p8), %s1789_s3, 1024  }
 0x3e2   : > { %2346 = vsyncadd (%p2102_p8), %s1789_s3, 4294966272  ;;  %s26_s26 = sadd.s32 1, %s2385_s26   ;;  %s2913_s30 = sld [smem:[#allocation14_spill]] }
 0x3e3   : > { %p23_p9 = scmp.ge.s32.totalorder %s26_s26, 10   ;;  %s2914_s19 = sld [smem:[#allocation21_spill]] }
 0x3e4   : > { %s2915_s20 = sld [smem:[#allocation15_spill]]  ;;  %s2921_s17 = smov %s2353_s18 }
 0x3e5   : > { %s2916_s21 = sld [smem:[#allocation22_spill]]  ;;  %25 = sbr.rel (!%p23_p9) target bundleno = 20 (0x14), region = 229 }
 0x3e6   : > { %s2917_s22 = sld [smem:[#allocation16_spill]] }
 0x3e7   : > { %s2918_s23 = sld [smem:[#allocation17_spill]] }
 0x3e8   : > { %s2919_s24 = sld [smem:[#allocation18_spill]]  ;;  %s2922_s18 = smov %s2913_s30 }
 0x3e9   : > { %s2920_s25 = sld [smem:[#allocation19_spill]] }
 0x3ea   :  { %1795 = vsyncpa [#allocation6], 1 }
 0x3eb   :  { %1797 = vsyncpa [#allocation6 + $0x1], 1 }
 0x3ec   :  { %1798 = vsyncpa [#allocation9], 1 }
 0x3ed   :  { %1799 = vsyncpa [#allocation7], 1 }
 0x3ee   :  { %1801 = vsyncpa [#allocation7 + $0x1], 1 }

</bundles_post_ra>
